<compile_context>
chip_gen: v7x
topology: tpu7x:2x2x1
jax: 0.10.0
libtpu: 0.0.40
codegen_flags: <defaults>
</compile_context>

<pallas_src>
import functools

import jax
import jax.numpy as jnp
from jax import lax
from jax.experimental import pallas as pl
from jax.experimental.pallas import tpu as pltpu


def make_blur_kernel(k):
    """JAX port of PyTorch `make_kernel`: outer-product a 1-D kernel, normalize."""
    k = jnp.asarray(k, jnp.float32)
    if k.ndim == 1:
        k = k[None, :] * k[:, None]
    return k / jnp.sum(k)


def _pick_channel_block(C, H_pad, W_pad, itemsize, budget_bytes=4 << 20):
    """Largest legal channel block (== C, or a multiple of 128 dividing C)
    whose input slab stays under `budget_bytes` (keeps double-buffered blocks
    well inside v7x's 64 MiB / v5e's raised scoped VMEM)."""
    if C % 128 != 0 or H_pad * W_pad * C * itemsize <= budget_bytes:
        return C
    best = 128
    for cand in range(128, C + 1, 128):
        if C % cand == 0 and H_pad * W_pad * cand * itemsize <= budget_bytes:
            best = cand
    return best


def _downsample_kernel(a_ref, x_ref, o_ref, *, factor, ntaps_h, out_h):
    """One grid step: (H_pad, W_pad, C_blk) slab -> (out_h, out_w, C_blk).

    a_ref: (KH, out_w, W_pad) constant tap matrices, f32
    x_ref: (H_pad, W_pad, C_blk) padded channels-last input slab
    o_ref: (out_h, out_w, C_blk) output slab
    """
    def row_body(oy, carry):
        acc = jnp.zeros(o_ref.shape[1:], jnp.float32)        # (out_w, C_blk)
        base = oy * factor
        for kh in range(ntaps_h):                             # static, small (e.g. 4)
            row = x_ref[base + kh].astype(jnp.float32)        # (W_pad, C_blk)
            acc = acc + jnp.dot(a_ref[kh], row,
                                preferred_element_type=jnp.float32)
        o_ref[oy] = acc.astype(o_ref.dtype)
        return carry

    if out_h <= 32:
        lax.fori_loop(0, out_h, row_body, 0, unroll=True)
    else:
        lax.fori_loop(0, out_h, row_body, 0)


def downsample(x, kernel, factor=2):
    """Forward pass of StyleGAN `Downsample` (upfirdn2d, up=1, down=factor).

    x: (B, C, H, W) NCHW. kernel: 1-D or 2-D blur kernel (e.g. [1, 3, 3, 1]).
    Returns (B, C, out_h, out_w) NCHW.
    """
    k2d = make_blur_kernel(kernel)
    KH, KW = k2d.shape
    d = int(factor)
    p = KH - d
    pad0, pad1 = (p + 1) // 2, p // 2

    B, C, H, W = x.shape
    H_pad = H + pad0 + pad1
    W_pad = W + pad0 + pad1
    out_h = (H_pad - KH + d) // d
    out_w = (W_pad - KW + d) // d

    # F.conv2d (cross-correlation) with flip(kernel)  ==  taps flip(k2d).
    kf = k2d[::-1, ::-1]

    # Constant per-kernel-row matrices folding the W-direction filter and the
    # stride-d decimation into one matmul:  A[kh, ox, d*ox + kw] = kf[kh, kw]
    j = jnp.arange(W_pad)[None, :]            # (1, W_pad)
    ox = jnp.arange(out_w)[:, None]           # (out_w, 1)
    rel = j - d * ox                          # (out_w, W_pad)
    valid = (rel >= 0) & (rel < KW)
    rel_c = jnp.clip(rel, 0, KW - 1)
    A = jnp.where(valid[None, :, :], kf[:, rel_c], 0.0).astype(jnp.float32)

    # Channels-last + spatial zero padding (wrapper-side layout plumbing so the
    # kernel's lane dim is C). lax.pad also handles negative pads (cropping),
    # matching upfirdn2d's pad/crop semantics.
    x_cl = jnp.transpose(x, (0, 2, 3, 1))     # (B, H, W, C)
    zero = jnp.zeros((), x.dtype)
    x_pad = lax.pad(x_cl, zero,
                    ((0, 0, 0), (pad0, pad1, 0), (pad0, pad1, 0), (0, 0, 0)))

    itemsize = jnp.dtype(x.dtype).itemsize
    cb = _pick_channel_block(C, H_pad, W_pad, itemsize)
    n_cb = C // cb
    # TODO(synk): very large H_pad*W_pad*C_blk slabs would need overlapping
    # H-band tiling via manual DMA (BlockSpec blocks cannot overlap); not
    # needed at StyleGAN feature-map sizes with channel blocking.

    kernel_fn = functools.partial(_downsample_kernel, factor=d,
                                  ntaps_h=KH, out_h=out_h)

    out_cl = pl.pallas_call(
        kernel_fn,
        out_shape=jax.ShapeDtypeStruct((B, out_h, out_w, C), x.dtype),
        grid=(B, n_cb),
        in_specs=[
            # tap matrices: tiny, constant across the grid (fetched once)
            pl.BlockSpec((KH, out_w, W_pad), lambda b, c: (0, 0, 0)),
            # padded input slab; leading batch dim squeezed out of the kernel ref
            pl.BlockSpec((None, H_pad, W_pad, cb), lambda b, c: (b, 0, 0, c)),
        ],
        out_specs=pl.BlockSpec((None, out_h, out_w, cb),
                               lambda b, c: (b, 0, 0, c)),
        compiler_params=pltpu.CompilerParams(
            dimension_semantics=("parallel", "parallel"),
            vmem_limit_bytes=32 * 1024 * 1024,
        ),
    )(A, x_pad)

    return jnp.transpose(out_cl, (0, 3, 1, 2))   # back to NCHW


class Downsample:
    """Forward-pass mirror of the PyTorch module."""

    def __init__(self, kernel, factor=2):
        self.factor = factor
        self.kernel = kernel

    def __call__(self, x):
        return downsample(x, self.kernel, factor=self.factor)


def _reference_downsample(x, kernel, factor=2):
    """Pure-JAX shift-and-add reference mirroring upfirdn2d_native math."""
    k2d = make_blur_kernel(kernel)
    KH, KW = k2d.shape
    d = int(factor)
    p = KH - d
    pad0, pad1 = (p + 1) // 2, p // 2
    B, C, H, W = x.shape
    xp = jnp.pad(x.astype(jnp.float32),
                 ((0, 0), (0, 0), (pad0, pad1), (pad0, pad1)))
    kf = k2d[::-1, ::-1]
    H_pad, W_pad = H + pad0 + pad1, W + pad0 + pad1
    out_h = (H_pad - KH + d) // d
    out_w = (W_pad - KW + d) // d
    out = jnp.zeros((B, C, out_h, out_w), jnp.float32)
    for kh in range(KH):
        for kw in range(KW):
            sl = xp[:, :, kh: kh + d * (out_h - 1) + 1: d,
                          kw: kw + d * (out_w - 1) + 1: d]
            out = out + kf[kh, kw] * sl
    return out.astype(x.dtype)


if __name__ == "__main__":
    key = jax.random.PRNGKey(0)
    B, C, H, W = 2, 4, 16, 16
    x = jax.random.normal(key, (B, C, H, W), dtype=jnp.float32)

    blur_kernel = [1.0, 3.0, 3.0, 1.0]   # standard StyleGAN blur kernel
    factor = 2

    mod = Downsample(blur_kernel, factor=factor)
    out = jax.block_until_ready(mod(x))

    ref = _reference_downsample(x, blur_kernel, factor=factor)
    assert out.shape == (B, C, H // factor, W // factor), out.shape
    max_err = float(jnp.max(jnp.abs(out - ref)))
    assert jnp.allclose(out, ref, atol=1e-5, rtol=1e-5), f"max err {max_err}"

    print("KERNEL_OK")
</pallas_src>

<mosaic_0001>
module attributes {stable_mosaic.version = 11 : i64} {
  func.func @_downsample_kernel(%arg0: i32, %arg1: i32, %arg2: memref<4x8x18xf32, #tpu.memory_space<vmem>>, %arg3: memref<1x18x18x4xf32, #tpu.memory_space<vmem>>, %arg4: memref<1x8x8x4xf32, #tpu.memory_space<vmem>>) attributes {dimension_semantics = [#tpu.dimension_semantics<parallel>, #tpu.dimension_semantics<parallel>], iteration_bounds = array<i64: 2, 1>, scalar_prefetch = 0 : i64, scratch_operands = 0 : i64, tpu.core_type = #tpu.core_type<tc>, window_params = [{pipeline_mode = #tpu.pipeline_mode<synchronous>, transform_indices = @transform_0, window_bounds = array<i64: 4, 8, 18>}, {transform_indices = @transform_1, window_bounds = array<i64: 1, 18, 18, 4>}, {transform_indices = @transform_2, window_bounds = array<i64: 1, 8, 8, 4>}]} {
    %c0_i32 = arith.constant 0 : i32
    %cst = arith.constant 0.000000e+00 : f32
    %0 = vector.broadcast %cst : f32 to vector<8x4xf32>
    %c2_i32 = arith.constant 2 : i32
    %1 = arith.muli %c0_i32, %c2_i32 : i32
    %c0_i32_0 = arith.constant 0 : i32
    %2 = arith.addi %1, %c0_i32_0 : i32
    %c0 = arith.constant 0 : index
    %3 = arith.index_cast %2 : i32 to index
    %c0_1 = arith.constant 0 : index
    %c0_2 = arith.constant 0 : index
    %4 = vector.load %arg3[%c0, %3, %c0_1, %c0_2] : memref<1x18x18x4xf32, #tpu.memory_space<vmem>>, vector<1x1x18x4xf32>
    %5 = vector.shape_cast %4 : vector<1x1x18x4xf32> to vector<18x4xf32>
    %c0_3 = arith.constant 0 : index
    %c0_4 = arith.constant 0 : index
    %c0_5 = arith.constant 0 : index
    %6 = vector.load %arg2[%c0_3, %c0_4, %c0_5] : memref<4x8x18xf32, #tpu.memory_space<vmem>>, vector<1x8x18xf32>
    %7 = vector.shape_cast %6 : vector<1x8x18xf32> to vector<8x18xf32>
    %cst_6 = arith.constant dense<0.000000e+00> : vector<8x4xf32>
    %8 = tpu.matmul %7, %5, %cst_6 {dimension_numbers = #tpu.dot_dimension_numbers<[1], [0], [0], [1], [0, 0, 1, 1], [], []>} : vector<8x18xf32>, vector<18x4xf32>, vector<8x4xf32> -> vector<8x4xf32>
    %9 = arith.addf %0, %8 : vector<8x4xf32>
    %c1_i32 = arith.constant 1 : i32
    %10 = arith.addi %1, %c1_i32 : i32
    %c0_7 = arith.constant 0 : index
    %11 = arith.index_cast %10 : i32 to index
    %c0_8 = arith.constant 0 : index
    %c0_9 = arith.constant 0 : index
    %12 = vector.load %arg3[%c0_7, %11, %c0_8, %c0_9] : memref<1x18x18x4xf32, #tpu.memory_space<vmem>>, vector<1x1x18x4xf32>
    %13 = vector.shape_cast %12 : vector<1x1x18x4xf32> to vector<18x4xf32>
    %c1 = arith.constant 1 : index
    %c0_10 = arith.constant 0 : index
    %c0_11 = arith.constant 0 : index
    %14 = vector.load %arg2[%c1, %c0_10, %c0_11] : memref<4x8x18xf32, #tpu.memory_space<vmem>>, vector<1x8x18xf32>
    %15 = vector.shape_cast %14 : vector<1x8x18xf32> to vector<8x18xf32>
    %cst_12 = arith.constant dense<0.000000e+00> : vector<8x4xf32>
    %16 = tpu.matmul %15, %13, %cst_12 {dimension_numbers = #tpu.dot_dimension_numbers<[1], [0], [0], [1], [0, 0, 1, 1], [], []>} : vector<8x18xf32>, vector<18x4xf32>, vector<8x4xf32> -> vector<8x4xf32>
    %17 = arith.addf %9, %16 : vector<8x4xf32>
    %c2_i32_13 = arith.constant 2 : i32
    %18 = arith.addi %1, %c2_i32_13 : i32
    %c0_14 = arith.constant 0 : index
    %19 = arith.index_cast %18 : i32 to index
    %c0_15 = arith.constant 0 : index
    %c0_16 = arith.constant 0 : index
    %20 = vector.load %arg3[%c0_14, %19, %c0_15, %c0_16] : memref<1x18x18x4xf32, #tpu.memory_space<vmem>>, vector<1x1x18x4xf32>
    %21 = vector.shape_cast %20 : vector<1x1x18x4xf32> to vector<18x4xf32>
    %c2 = arith.constant 2 : index
    %c0_17 = arith.constant 0 : index
    %c0_18 = arith.constant 0 : index
    %22 = vector.load %arg2[%c2, %c0_17, %c0_18] : memref<4x8x18xf32, #tpu.memory_space<vmem>>, vector<1x8x18xf32>
    %23 = vector.shape_cast %22 : vector<1x8x18xf32> to vector<8x18xf32>
    %cst_19 = arith.constant dense<0.000000e+00> : vector<8x4xf32>
    %24 = tpu.matmul %23, %21, %cst_19 {dimension_numbers = #tpu.dot_dimension_numbers<[1], [0], [0], [1], [0, 0, 1, 1], [], []>} : vector<8x18xf32>, vector<18x4xf32>, vector<8x4xf32> -> vector<8x4xf32>
    %25 = arith.addf %17, %24 : vector<8x4xf32>
    %c3_i32 = arith.constant 3 : i32
    %26 = arith.addi %1, %c3_i32 : i32
    %c0_20 = arith.constant 0 : index
    %27 = arith.index_cast %26 : i32 to index
    %c0_21 = arith.constant 0 : index
    %c0_22 = arith.constant 0 : index
    %28 = vector.load %arg3[%c0_20, %27, %c0_21, %c0_22] : memref<1x18x18x4xf32, #tpu.memory_space<vmem>>, vector<1x1x18x4xf32>
    %29 = vector.shape_cast %28 : vector<1x1x18x4xf32> to vector<18x4xf32>
    %c3 = arith.constant 3 : index
    %c0_23 = arith.constant 0 : index
    %c0_24 = arith.constant 0 : index
    %30 = vector.load %arg2[%c3, %c0_23, %c0_24] : memref<4x8x18xf32, #tpu.memory_space<vmem>>, vector<1x8x18xf32>
    %31 = vector.shape_cast %30 : vector<1x8x18xf32> to vector<8x18xf32>
    %cst_25 = arith.constant dense<0.000000e+00> : vector<8x4xf32>
    %32 = tpu.matmul %31, %29, %cst_25 {dimension_numbers = #tpu.dot_dimension_numbers<[1], [0], [0], [1], [0, 0, 1, 1], [], []>} : vector<8x18xf32>, vector<18x4xf32>, vector<8x4xf32> -> vector<8x4xf32>
    %33 = arith.addf %25, %32 : vector<8x4xf32>
    %c0_26 = arith.constant 0 : index
    %34 = arith.index_cast %c0_i32 : i32 to index
    %c0_27 = arith.constant 0 : index
    %c0_28 = arith.constant 0 : index
    %35 = vector.load %arg4[%c0_26, %34, %c0_27, %c0_28] : memref<1x8x8x4xf32, #tpu.memory_space<vmem>>, vector<1x1x8x4xf32>
    %36 = vector.shape_cast %35 : vector<1x1x8x4xf32> to vector<8x4xf32>
    %37 = vector.shape_cast %33 : vector<8x4xf32> to vector<1x1x8x4xf32>
    tpu.vector_store %arg4[%c0_26, %34, %c0_27, %c0_28], %37 {strides = array<i32>} : memref<1x8x8x4xf32, #tpu.memory_space<vmem>>, vector<1x1x8x4xf32>,
    %c1_i32_29 = arith.constant 1 : i32
    %cst_30 = arith.constant 0.000000e+00 : f32
    %38 = vector.broadcast %cst_30 : f32 to vector<8x4xf32>
    %c2_i32_31 = arith.constant 2 : i32
    %39 = arith.muli %c1_i32_29, %c2_i32_31 : i32
    %c0_i32_32 = arith.constant 0 : i32
    %40 = arith.addi %39, %c0_i32_32 : i32
    %c0_33 = arith.constant 0 : index
    %41 = arith.index_cast %40 : i32 to index
    %c0_34 = arith.constant 0 : index
    %c0_35 = arith.constant 0 : index
    %42 = vector.load %arg3[%c0_33, %41, %c0_34, %c0_35] : memref<1x18x18x4xf32, #tpu.memory_space<vmem>>, vector<1x1x18x4xf32>
    %43 = vector.shape_cast %42 : vector<1x1x18x4xf32> to vector<18x4xf32>
    %c0_36 = arith.constant 0 : index
    %c0_37 = arith.constant 0 : index
    %c0_38 = arith.constant 0 : index
    %44 = vector.load %arg2[%c0_36, %c0_37, %c0_38] : memref<4x8x18xf32, #tpu.memory_space<vmem>>, vector<1x8x18xf32>
    %45 = vector.shape_cast %44 : vector<1x8x18xf32> to vector<8x18xf32>
    %cst_39 = arith.constant dense<0.000000e+00> : vector<8x4xf32>
    %46 = tpu.matmul %45, %43, %cst_39 {dimension_numbers = #tpu.dot_dimension_numbers<[1], [0], [0], [1], [0, 0, 1, 1], [], []>} : vector<8x18xf32>, vector<18x4xf32>, vector<8x4xf32> -> vector<8x4xf32>
    %47 = arith.addf %38, %46 : vector<8x4xf32>
    %c1_i32_40 = arith.constant 1 : i32
    %48 = arith.addi %39, %c1_i32_40 : i32
    %c0_41 = arith.constant 0 : index
    %49 = arith.index_cast %48 : i32 to index
    %c0_42 = arith.constant 0 : index
    %c0_43 = arith.constant 0 : index
    %50 = vector.load %arg3[%c0_41, %49, %c0_42, %c0_43] : memref<1x18x18x4xf32, #tpu.memory_space<vmem>>, vector<1x1x18x4xf32>
    %51 = vector.shape_cast %50 : vector<1x1x18x4xf32> to vector<18x4xf32>
    %c1_44 = arith.constant 1 : index
    %c0_45 = arith.constant 0 : index
    %c0_46 = arith.constant 0 : index
    %52 = vector.load %arg2[%c1_44, %c0_45, %c0_46] : memref<4x8x18xf32, #tpu.memory_space<vmem>>, vector<1x8x18xf32>
    %53 = vector.shape_cast %52 : vector<1x8x18xf32> to vector<8x18xf32>
    %cst_47 = arith.constant dense<0.000000e+00> : vector<8x4xf32>
    %54 = tpu.matmul %53, %51, %cst_47 {dimension_numbers = #tpu.dot_dimension_numbers<[1], [0], [0], [1], [0, 0, 1, 1], [], []>} : vector<8x18xf32>, vector<18x4xf32>, vector<8x4xf32> -> vector<8x4xf32>
    %55 = arith.addf %47, %54 : vector<8x4xf32>
    %c2_i32_48 = arith.constant 2 : i32
    %56 = arith.addi %39, %c2_i32_48 : i32
    %c0_49 = arith.constant 0 : index
    %57 = arith.index_cast %56 : i32 to index
    %c0_50 = arith.constant 0 : index
    %c0_51 = arith.constant 0 : index
    %58 = vector.load %arg3[%c0_49, %57, %c0_50, %c0_51] : memref<1x18x18x4xf32, #tpu.memory_space<vmem>>, vector<1x1x18x4xf32>
    %59 = vector.shape_cast %58 : vector<1x1x18x4xf32> to vector<18x4xf32>
    %c2_52 = arith.constant 2 : index
    %c0_53 = arith.constant 0 : index
    %c0_54 = arith.constant 0 : index
    %60 = vector.load %arg2[%c2_52, %c0_53, %c0_54] : memref<4x8x18xf32, #tpu.memory_space<vmem>>, vector<1x8x18xf32>
    %61 = vector.shape_cast %60 : vector<1x8x18xf32> to vector<8x18xf32>
    %cst_55 = arith.constant dense<0.000000e+00> : vector<8x4xf32>
    %62 = tpu.matmul %61, %59, %cst_55 {dimension_numbers = #tpu.dot_dimension_numbers<[1], [0], [0], [1], [0, 0, 1, 1], [], []>} : vector<8x18xf32>, vector<18x4xf32>, vector<8x4xf32> -> vector<8x4xf32>
    %63 = arith.addf %55, %62 : vector<8x4xf32>
    %c3_i32_56 = arith.constant 3 : i32
    %64 = arith.addi %39, %c3_i32_56 : i32
    %c0_57 = arith.constant 0 : index
    %65 = arith.index_cast %64 : i32 to index
    %c0_58 = arith.constant 0 : index
    %c0_59 = arith.constant 0 : index
    %66 = vector.load %arg3[%c0_57, %65, %c0_58, %c0_59] : memref<1x18x18x4xf32, #tpu.memory_space<vmem>>, vector<1x1x18x4xf32>
    %67 = vector.shape_cast %66 : vector<1x1x18x4xf32> to vector<18x4xf32>
    %c3_60 = arith.constant 3 : index
    %c0_61 = arith.constant 0 : index
    %c0_62 = arith.constant 0 : index
    %68 = vector.load %arg2[%c3_60, %c0_61, %c0_62] : memref<4x8x18xf32, #tpu.memory_space<vmem>>, vector<1x8x18xf32>
    %69 = vector.shape_cast %68 : vector<1x8x18xf32> to vector<8x18xf32>
    %cst_63 = arith.constant dense<0.000000e+00> : vector<8x4xf32>
    %70 = tpu.matmul %69, %67, %cst_63 {dimension_numbers = #tpu.dot_dimension_numbers<[1], [0], [0], [1], [0, 0, 1, 1], [], []>} : vector<8x18xf32>, vector<18x4xf32>, vector<8x4xf32> -> vector<8x4xf32>
    %71 = arith.addf %63, %70 : vector<8x4xf32>
    %c0_64 = arith.constant 0 : index
    %72 = arith.index_cast %c1_i32_29 : i32 to index
    %c0_65 = arith.constant 0 : index
    %c0_66 = arith.constant 0 : index
    %73 = vector.load %arg4[%c0_64, %72, %c0_65, %c0_66] : memref<1x8x8x4xf32, #tpu.memory_space<vmem>>, vector<1x1x8x4xf32>
    %74 = vector.shape_cast %73 : vector<1x1x8x4xf32> to vector<8x4xf32>
    %75 = vector.shape_cast %71 : vector<8x4xf32> to vector<1x1x8x4xf32>
    tpu.vector_store %arg4[%c0_64, %72, %c0_65, %c0_66], %75 {strides = array<i32>} : memref<1x8x8x4xf32, #tpu.memory_space<vmem>>, vector<1x1x8x4xf32>,
    %c2_i32_67 = arith.constant 2 : i32
    %cst_68 = arith.constant 0.000000e+00 : f32
    %76 = vector.broadcast %cst_68 : f32 to vector<8x4xf32>
    %c2_i32_69 = arith.constant 2 : i32
    %77 = arith.muli %c2_i32_67, %c2_i32_69 : i32
    %c0_i32_70 = arith.constant 0 : i32
    %78 = arith.addi %77, %c0_i32_70 : i32
    %c0_71 = arith.constant 0 : index
    %79 = arith.index_cast %78 : i32 to index
    %c0_72 = arith.constant 0 : index
    %c0_73 = arith.constant 0 : index
    %80 = vector.load %arg3[%c0_71, %79, %c0_72, %c0_73] : memref<1x18x18x4xf32, #tpu.memory_space<vmem>>, vector<1x1x18x4xf32>
    %81 = vector.shape_cast %80 : vector<1x1x18x4xf32> to vector<18x4xf32>
    %c0_74 = arith.constant 0 : index
    %c0_75 = arith.constant 0 : index
    %c0_76 = arith.constant 0 : index
    %82 = vector.load %arg2[%c0_74, %c0_75, %c0_76] : memref<4x8x18xf32, #tpu.memory_space<vmem>>, vector<1x8x18xf32>
    %83 = vector.shape_cast %82 : vector<1x8x18xf32> to vector<8x18xf32>
    %cst_77 = arith.constant dense<0.000000e+00> : vector<8x4xf32>
    %84 = tpu.matmul %83, %81, %cst_77 {dimension_numbers = #tpu.dot_dimension_numbers<[1], [0], [0], [1], [0, 0, 1, 1], [], []>} : vector<8x18xf32>, vector<18x4xf32>, vector<8x4xf32> -> vector<8x4xf32>
    %85 = arith.addf %76, %84 : vector<8x4xf32>
    %c1_i32_78 = arith.constant 1 : i32
    %86 = arith.addi %77, %c1_i32_78 : i32
    %c0_79 = arith.constant 0 : index
    %87 = arith.index_cast %86 : i32 to index
    %c0_80 = arith.constant 0 : index
    %c0_81 = arith.constant 0 : index
    %88 = vector.load %arg3[%c0_79, %87, %c0_80, %c0_81] : memref<1x18x18x4xf32, #tpu.memory_space<vmem>>, vector<1x1x18x4xf32>
    %89 = vector.shape_cast %88 : vector<1x1x18x4xf32> to vector<18x4xf32>
    %c1_82 = arith.constant 1 : index
    %c0_83 = arith.constant 0 : index
    %c0_84 = arith.constant 0 : index
    %90 = vector.load %arg2[%c1_82, %c0_83, %c0_84] : memref<4x8x18xf32, #tpu.memory_space<vmem>>, vector<1x8x18xf32>
    %91 = vector.shape_cast %90 : vector<1x8x18xf32> to vector<8x18xf32>
    %cst_85 = arith.constant dense<0.000000e+00> : vector<8x4xf32>
    %92 = tpu.matmul %91, %89, %cst_85 {dimension_numbers = #tpu.dot_dimension_numbers<[1], [0], [0], [1], [0, 0, 1, 1], [], []>} : vector<8x18xf32>, vector<18x4xf32>, vector<8x4xf32> -> vector<8x4xf32>
    %93 = arith.addf %85, %92 : vector<8x4xf32>
    %c2_i32_86 = arith.constant 2 : i32
    %94 = arith.addi %77, %c2_i32_86 : i32
    %c0_87 = arith.constant 0 : index
    %95 = arith.index_cast %94 : i32 to index
    %c0_88 = arith.constant 0 : index
    %c0_89 = arith.constant 0 : index
    %96 = vector.load %arg3[%c0_87, %95, %c0_88, %c0_89] : memref<1x18x18x4xf32, #tpu.memory_space<vmem>>, vector<1x1x18x4xf32>
    %97 = vector.shape_cast %96 : vector<1x1x18x4xf32> to vector<18x4xf32>
    %c2_90 = arith.constant 2 : index
    %c0_91 = arith.constant 0 : index
    %c0_92 = arith.constant 0 : index
    %98 = vector.load %arg2[%c2_90, %c0_91, %c0_92] : memref<4x8x18xf32, #tpu.memory_space<vmem>>, vector<1x8x18xf32>
    %99 = vector.shape_cast %98 : vector<1x8x18xf32> to vector<8x18xf32>
    %cst_93 = arith.constant dense<0.000000e+00> : vector<8x4xf32>
    %100 = tpu.matmul %99, %97, %cst_93 {dimension_numbers = #tpu.dot_dimension_numbers<[1], [0], [0], [1], [0, 0, 1, 1], [], []>} : vector<8x18xf32>, vector<18x4xf32>, vector<8x4xf32> -> vector<8x4xf32>
    %101 = arith.addf %93, %100 : vector<8x4xf32>
    %c3_i32_94 = arith.constant 3 : i32
    %102 = arith.addi %77, %c3_i32_94 : i32
    %c0_95 = arith.constant 0 : index
    %103 = arith.index_cast %102 : i32 to index
    %c0_96 = arith.constant 0 : index
    %c0_97 = arith.constant 0 : index
    %104 = vector.load %arg3[%c0_95, %103, %c0_96, %c0_97] : memref<1x18x18x4xf32, #tpu.memory_space<vmem>>, vector<1x1x18x4xf32>
    %105 = vector.shape_cast %104 : vector<1x1x18x4xf32> to vector<18x4xf32>
    %c3_98 = arith.constant 3 : index
    %c0_99 = arith.constant 0 : index
    %c0_100 = arith.constant 0 : index
    %106 = vector.load %arg2[%c3_98, %c0_99, %c0_100] : memref<4x8x18xf32, #tpu.memory_space<vmem>>, vector<1x8x18xf32>
    %107 = vector.shape_cast %106 : vector<1x8x18xf32> to vector<8x18xf32>
    %cst_101 = arith.constant dense<0.000000e+00> : vector<8x4xf32>
    %108 = tpu.matmul %107, %105, %cst_101 {dimension_numbers = #tpu.dot_dimension_numbers<[1], [0], [0], [1], [0, 0, 1, 1], [], []>} : vector<8x18xf32>, vector<18x4xf32>, vector<8x4xf32> -> vector<8x4xf32>
    %109 = arith.addf %101, %108 : vector<8x4xf32>
    %c0_102 = arith.constant 0 : index
    %110 = arith.index_cast %c2_i32_67 : i32 to index
    %c0_103 = arith.constant 0 : index
    %c0_104 = arith.constant 0 : index
    %111 = vector.load %arg4[%c0_102, %110, %c0_103, %c0_104] : memref<1x8x8x4xf32, #tpu.memory_space<vmem>>, vector<1x1x8x4xf32>
    %112 = vector.shape_cast %111 : vector<1x1x8x4xf32> to vector<8x4xf32>
    %113 = vector.shape_cast %109 : vector<8x4xf32> to vector<1x1x8x4xf32>
    tpu.vector_store %arg4[%c0_102, %110, %c0_103, %c0_104], %113 {strides = array<i32>} : memref<1x8x8x4xf32, #tpu.memory_space<vmem>>, vector<1x1x8x4xf32>,
    %c3_i32_105 = arith.constant 3 : i32
    %cst_106 = arith.constant 0.000000e+00 : f32
    %114 = vector.broadcast %cst_106 : f32 to vector<8x4xf32>
    %c2_i32_107 = arith.constant 2 : i32
    %115 = arith.muli %c3_i32_105, %c2_i32_107 : i32
    %c0_i32_108 = arith.constant 0 : i32
    %116 = arith.addi %115, %c0_i32_108 : i32
    %c0_109 = arith.constant 0 : index
    %117 = arith.index_cast %116 : i32 to index
    %c0_110 = arith.constant 0 : index
    %c0_111 = arith.constant 0 : index
    %118 = vector.load %arg3[%c0_109, %117, %c0_110, %c0_111] : memref<1x18x18x4xf32, #tpu.memory_space<vmem>>, vector<1x1x18x4xf32>
    %119 = vector.shape_cast %118 : vector<1x1x18x4xf32> to vector<18x4xf32>
    %c0_112 = arith.constant 0 : index
    %c0_113 = arith.constant 0 : index
    %c0_114 = arith.constant 0 : index
    %120 = vector.load %arg2[%c0_112, %c0_113, %c0_114] : memref<4x8x18xf32, #tpu.memory_space<vmem>>, vector<1x8x18xf32>
    %121 = vector.shape_cast %120 : vector<1x8x18xf32> to vector<8x18xf32>
    %cst_115 = arith.constant dense<0.000000e+00> : vector<8x4xf32>
    %122 = tpu.matmul %121, %119, %cst_115 {dimension_numbers = #tpu.dot_dimension_numbers<[1], [0], [0], [1], [0, 0, 1, 1], [], []>} : vector<8x18xf32>, vector<18x4xf32>, vector<8x4xf32> -> vector<8x4xf32>
    %123 = arith.addf %114, %122 : vector<8x4xf32>
    %c1_i32_116 = arith.constant 1 : i32
    %124 = arith.addi %115, %c1_i32_116 : i32
    %c0_117 = arith.constant 0 : index
    %125 = arith.index_cast %124 : i32 to index
    %c0_118 = arith.constant 0 : index
    %c0_119 = arith.constant 0 : index
    %126 = vector.load %arg3[%c0_117, %125, %c0_118, %c0_119] : memref<1x18x18x4xf32, #tpu.memory_space<vmem>>, vector<1x1x18x4xf32>
    %127 = vector.shape_cast %126 : vector<1x1x18x4xf32> to vector<18x4xf32>
    %c1_120 = arith.constant 1 : index
    %c0_121 = arith.constant 0 : index
    %c0_122 = arith.constant 0 : index
    %128 = vector.load %arg2[%c1_120, %c0_121, %c0_122] : memref<4x8x18xf32, #tpu.memory_space<vmem>>, vector<1x8x18xf32>
    %129 = vector.shape_cast %128 : vector<1x8x18xf32> to vector<8x18xf32>
    %cst_123 = arith.constant dense<0.000000e+00> : vector<8x4xf32>
    %130 = tpu.matmul %129, %127, %cst_123 {dimension_numbers = #tpu.dot_dimension_numbers<[1], [0], [0], [1], [0, 0, 1, 1], [], []>} : vector<8x18xf32>, vector<18x4xf32>, vector<8x4xf32> -> vector<8x4xf32>
    %131 = arith.addf %123, %130 : vector<8x4xf32>
    %c2_i32_124 = arith.constant 2 : i32
    %132 = arith.addi %115, %c2_i32_124 : i32
    %c0_125 = arith.constant 0 : index
    %133 = arith.index_cast %132 : i32 to index
    %c0_126 = arith.constant 0 : index
    %c0_127 = arith.constant 0 : index
    %134 = vector.load %arg3[%c0_125, %133, %c0_126, %c0_127] : memref<1x18x18x4xf32, #tpu.memory_space<vmem>>, vector<1x1x18x4xf32>
    %135 = vector.shape_cast %134 : vector<1x1x18x4xf32> to vector<18x4xf32>
    %c2_128 = arith.constant 2 : index
    %c0_129 = arith.constant 0 : index
    %c0_130 = arith.constant 0 : index
    %136 = vector.load %arg2[%c2_128, %c0_129, %c0_130] : memref<4x8x18xf32, #tpu.memory_space<vmem>>, vector<1x8x18xf32>
    %137 = vector.shape_cast %136 : vector<1x8x18xf32> to vector<8x18xf32>
    %cst_131 = arith.constant dense<0.000000e+00> : vector<8x4xf32>
    %138 = tpu.matmul %137, %135, %cst_131 {dimension_numbers = #tpu.dot_dimension_numbers<[1], [0], [0], [1], [0, 0, 1, 1], [], []>} : vector<8x18xf32>, vector<18x4xf32>, vector<8x4xf32> -> vector<8x4xf32>
    %139 = arith.addf %131, %138 : vector<8x4xf32>
    %c3_i32_132 = arith.constant 3 : i32
    %140 = arith.addi %115, %c3_i32_132 : i32
    %c0_133 = arith.constant 0 : index
    %141 = arith.index_cast %140 : i32 to index
    %c0_134 = arith.constant 0 : index
    %c0_135 = arith.constant 0 : index
    %142 = vector.load %arg3[%c0_133, %141, %c0_134, %c0_135] : memref<1x18x18x4xf32, #tpu.memory_space<vmem>>, vector<1x1x18x4xf32>
    %143 = vector.shape_cast %142 : vector<1x1x18x4xf32> to vector<18x4xf32>
    %c3_136 = arith.constant 3 : index
    %c0_137 = arith.constant 0 : index
    %c0_138 = arith.constant 0 : index
    %144 = vector.load %arg2[%c3_136, %c0_137, %c0_138] : memref<4x8x18xf32, #tpu.memory_space<vmem>>, vector<1x8x18xf32>
    %145 = vector.shape_cast %144 : vector<1x8x18xf32> to vector<8x18xf32>
    %cst_139 = arith.constant dense<0.000000e+00> : vector<8x4xf32>
    %146 = tpu.matmul %145, %143, %cst_139 {dimension_numbers = #tpu.dot_dimension_numbers<[1], [0], [0], [1], [0, 0, 1, 1], [], []>} : vector<8x18xf32>, vector<18x4xf32>, vector<8x4xf32> -> vector<8x4xf32>
    %147 = arith.addf %139, %146 : vector<8x4xf32>
    %c0_140 = arith.constant 0 : index
    %148 = arith.index_cast %c3_i32_105 : i32 to index
    %c0_141 = arith.constant 0 : index
    %c0_142 = arith.constant 0 : index
    %149 = vector.load %arg4[%c0_140, %148, %c0_141, %c0_142] : memref<1x8x8x4xf32, #tpu.memory_space<vmem>>, vector<1x1x8x4xf32>
    %150 = vector.shape_cast %149 : vector<1x1x8x4xf32> to vector<8x4xf32>
    %151 = vector.shape_cast %147 : vector<8x4xf32> to vector<1x1x8x4xf32>
    tpu.vector_store %arg4[%c0_140, %148, %c0_141, %c0_142], %151 {strides = array<i32>} : memref<1x8x8x4xf32, #tpu.memory_space<vmem>>, vector<1x1x8x4xf32>,
    %c4_i32 = arith.constant 4 : i32
    %cst_143 = arith.constant 0.000000e+00 : f32
    %152 = vector.broadcast %cst_143 : f32 to vector<8x4xf32>
    %c2_i32_144 = arith.constant 2 : i32
    %153 = arith.muli %c4_i32, %c2_i32_144 : i32
    %c0_i32_145 = arith.constant 0 : i32
    %154 = arith.addi %153, %c0_i32_145 : i32
    %c0_146 = arith.constant 0 : index
    %155 = arith.index_cast %154 : i32 to index
    %c0_147 = arith.constant 0 : index
    %c0_148 = arith.constant 0 : index
    %156 = vector.load %arg3[%c0_146, %155, %c0_147, %c0_148] : memref<1x18x18x4xf32, #tpu.memory_space<vmem>>, vector<1x1x18x4xf32>
    %157 = vector.shape_cast %156 : vector<1x1x18x4xf32> to vector<18x4xf32>
    %c0_149 = arith.constant 0 : index
    %c0_150 = arith.constant 0 : index
    %c0_151 = arith.constant 0 : index
    %158 = vector.load %arg2[%c0_149, %c0_150, %c0_151] : memref<4x8x18xf32, #tpu.memory_space<vmem>>, vector<1x8x18xf32>
    %159 = vector.shape_cast %158 : vector<1x8x18xf32> to vector<8x18xf32>
    %cst_152 = arith.constant dense<0.000000e+00> : vector<8x4xf32>
    %160 = tpu.matmul %159, %157, %cst_152 {dimension_numbers = #tpu.dot_dimension_numbers<[1], [0], [0], [1], [0, 0, 1, 1], [], []>} : vector<8x18xf32>, vector<18x4xf32>, vector<8x4xf32> -> vector<8x4xf32>
    %161 = arith.addf %152, %160 : vector<8x4xf32>
    %c1_i32_153 = arith.constant 1 : i32
    %162 = arith.addi %153, %c1_i32_153 : i32
    %c0_154 = arith.constant 0 : index
    %163 = arith.index_cast %162 : i32 to index
    %c0_155 = arith.constant 0 : index
    %c0_156 = arith.constant 0 : index
    %164 = vector.load %arg3[%c0_154, %163, %c0_155, %c0_156] : memref<1x18x18x4xf32, #tpu.memory_space<vmem>>, vector<1x1x18x4xf32>
    %165 = vector.shape_cast %164 : vector<1x1x18x4xf32> to vector<18x4xf32>
    %c1_157 = arith.constant 1 : index
    %c0_158 = arith.constant 0 : index
    %c0_159 = arith.constant 0 : index
    %166 = vector.load %arg2[%c1_157, %c0_158, %c0_159] : memref<4x8x18xf32, #tpu.memory_space<vmem>>, vector<1x8x18xf32>
    %167 = vector.shape_cast %166 : vector<1x8x18xf32> to vector<8x18xf32>
    %cst_160 = arith.constant dense<0.000000e+00> : vector<8x4xf32>
    %168 = tpu.matmul %167, %165, %cst_160 {dimension_numbers = #tpu.dot_dimension_numbers<[1], [0], [0], [1], [0, 0, 1, 1], [], []>} : vector<8x18xf32>, vector<18x4xf32>, vector<8x4xf32> -> vector<8x4xf32>
    %169 = arith.addf %161, %168 : vector<8x4xf32>
    %c2_i32_161 = arith.constant 2 : i32
    %170 = arith.addi %153, %c2_i32_161 : i32
    %c0_162 = arith.constant 0 : index
    %171 = arith.index_cast %170 : i32 to index
    %c0_163 = arith.constant 0 : index
    %c0_164 = arith.constant 0 : index
    %172 = vector.load %arg3[%c0_162, %171, %c0_163, %c0_164] : memref<1x18x18x4xf32, #tpu.memory_space<vmem>>, vector<1x1x18x4xf32>
    %173 = vector.shape_cast %172 : vector<1x1x18x4xf32> to vector<18x4xf32>
    %c2_165 = arith.constant 2 : index
    %c0_166 = arith.constant 0 : index
    %c0_167 = arith.constant 0 : index
    %174 = vector.load %arg2[%c2_165, %c0_166, %c0_167] : memref<4x8x18xf32, #tpu.memory_space<vmem>>, vector<1x8x18xf32>
    %175 = vector.shape_cast %174 : vector<1x8x18xf32> to vector<8x18xf32>
    %cst_168 = arith.constant dense<0.000000e+00> : vector<8x4xf32>
    %176 = tpu.matmul %175, %173, %cst_168 {dimension_numbers = #tpu.dot_dimension_numbers<[1], [0], [0], [1], [0, 0, 1, 1], [], []>} : vector<8x18xf32>, vector<18x4xf32>, vector<8x4xf32> -> vector<8x4xf32>
    %177 = arith.addf %169, %176 : vector<8x4xf32>
    %c3_i32_169 = arith.constant 3 : i32
    %178 = arith.addi %153, %c3_i32_169 : i32
    %c0_170 = arith.constant 0 : index
    %179 = arith.index_cast %178 : i32 to index
    %c0_171 = arith.constant 0 : index
    %c0_172 = arith.constant 0 : index
    %180 = vector.load %arg3[%c0_170, %179, %c0_171, %c0_172] : memref<1x18x18x4xf32, #tpu.memory_space<vmem>>, vector<1x1x18x4xf32>
    %181 = vector.shape_cast %180 : vector<1x1x18x4xf32> to vector<18x4xf32>
    %c3_173 = arith.constant 3 : index
    %c0_174 = arith.constant 0 : index
    %c0_175 = arith.constant 0 : index
    %182 = vector.load %arg2[%c3_173, %c0_174, %c0_175] : memref<4x8x18xf32, #tpu.memory_space<vmem>>, vector<1x8x18xf32>
    %183 = vector.shape_cast %182 : vector<1x8x18xf32> to vector<8x18xf32>
    %cst_176 = arith.constant dense<0.000000e+00> : vector<8x4xf32>
    %184 = tpu.matmul %183, %181, %cst_176 {dimension_numbers = #tpu.dot_dimension_numbers<[1], [0], [0], [1], [0, 0, 1, 1], [], []>} : vector<8x18xf32>, vector<18x4xf32>, vector<8x4xf32> -> vector<8x4xf32>
    %185 = arith.addf %177, %184 : vector<8x4xf32>
    %c0_177 = arith.constant 0 : index
    %186 = arith.index_cast %c4_i32 : i32 to index
    %c0_178 = arith.constant 0 : index
    %c0_179 = arith.constant 0 : index
    %187 = vector.load %arg4[%c0_177, %186, %c0_178, %c0_179] : memref<1x8x8x4xf32, #tpu.memory_space<vmem>>, vector<1x1x8x4xf32>
    %188 = vector.shape_cast %187 : vector<1x1x8x4xf32> to vector<8x4xf32>
    %189 = vector.shape_cast %185 : vector<8x4xf32> to vector<1x1x8x4xf32>
    tpu.vector_store %arg4[%c0_177, %186, %c0_178, %c0_179], %189 {strides = array<i32>} : memref<1x8x8x4xf32, #tpu.memory_space<vmem>>, vector<1x1x8x4xf32>,
    %c5_i32 = arith.constant 5 : i32
    %cst_180 = arith.constant 0.000000e+00 : f32
    %190 = vector.broadcast %cst_180 : f32 to vector<8x4xf32>
    %c2_i32_181 = arith.constant 2 : i32
    %191 = arith.muli %c5_i32, %c2_i32_181 : i32
    %c0_i32_182 = arith.constant 0 : i32
    %192 = arith.addi %191, %c0_i32_182 : i32
    %c0_183 = arith.constant 0 : index
    %193 = arith.index_cast %192 : i32 to index
    %c0_184 = arith.constant 0 : index
    %c0_185 = arith.constant 0 : index
    %194 = vector.load %arg3[%c0_183, %193, %c0_184, %c0_185] : memref<1x18x18x4xf32, #tpu.memory_space<vmem>>, vector<1x1x18x4xf32>
    %195 = vector.shape_cast %194 : vector<1x1x18x4xf32> to vector<18x4xf32>
    %c0_186 = arith.constant 0 : index
    %c0_187 = arith.constant 0 : index
    %c0_188 = arith.constant 0 : index
    %196 = vector.load %arg2[%c0_186, %c0_187, %c0_188] : memref<4x8x18xf32, #tpu.memory_space<vmem>>, vector<1x8x18xf32>
    %197 = vector.shape_cast %196 : vector<1x8x18xf32> to vector<8x18xf32>
    %cst_189 = arith.constant dense<0.000000e+00> : vector<8x4xf32>
    %198 = tpu.matmul %197, %195, %cst_189 {dimension_numbers = #tpu.dot_dimension_numbers<[1], [0], [0], [1], [0, 0, 1, 1], [], []>} : vector<8x18xf32>, vector<18x4xf32>, vector<8x4xf32> -> vector<8x4xf32>
    %199 = arith.addf %190, %198 : vector<8x4xf32>
    %c1_i32_190 = arith.constant 1 : i32
    %200 = arith.addi %191, %c1_i32_190 : i32
    %c0_191 = arith.constant 0 : index
    %201 = arith.index_cast %200 : i32 to index
    %c0_192 = arith.constant 0 : index
    %c0_193 = arith.constant 0 : index
    %202 = vector.load %arg3[%c0_191, %201, %c0_192, %c0_193] : memref<1x18x18x4xf32, #tpu.memory_space<vmem>>, vector<1x1x18x4xf32>
    %203 = vector.shape_cast %202 : vector<1x1x18x4xf32> to vector<18x4xf32>
    %c1_194 = arith.constant 1 : index
    %c0_195 = arith.constant 0 : index
    %c0_196 = arith.constant 0 : index
    %204 = vector.load %arg2[%c1_194, %c0_195, %c0_196] : memref<4x8x18xf32, #tpu.memory_space<vmem>>, vector<1x8x18xf32>
    %205 = vector.shape_cast %204 : vector<1x8x18xf32> to vector<8x18xf32>
    %cst_197 = arith.constant dense<0.000000e+00> : vector<8x4xf32>
    %206 = tpu.matmul %205, %203, %cst_197 {dimension_numbers = #tpu.dot_dimension_numbers<[1], [0], [0], [1], [0, 0, 1, 1], [], []>} : vector<8x18xf32>, vector<18x4xf32>, vector<8x4xf32> -> vector<8x4xf32>
    %207 = arith.addf %199, %206 : vector<8x4xf32>
    %c2_i32_198 = arith.constant 2 : i32
    %208 = arith.addi %191, %c2_i32_198 : i32
    %c0_199 = arith.constant 0 : index
    %209 = arith.index_cast %208 : i32 to index
    %c0_200 = arith.constant 0 : index
    %c0_201 = arith.constant 0 : index
    %210 = vector.load %arg3[%c0_199, %209, %c0_200, %c0_201] : memref<1x18x18x4xf32, #tpu.memory_space<vmem>>, vector<1x1x18x4xf32>
    %211 = vector.shape_cast %210 : vector<1x1x18x4xf32> to vector<18x4xf32>
    %c2_202 = arith.constant 2 : index
    %c0_203 = arith.constant 0 : index
    %c0_204 = arith.constant 0 : index
    %212 = vector.load %arg2[%c2_202, %c0_203, %c0_204] : memref<4x8x18xf32, #tpu.memory_space<vmem>>, vector<1x8x18xf32>
    %213 = vector.shape_cast %212 : vector<1x8x18xf32> to vector<8x18xf32>
    %cst_205 = arith.constant dense<0.000000e+00> : vector<8x4xf32>
    %214 = tpu.matmul %213, %211, %cst_205 {dimension_numbers = #tpu.dot_dimension_numbers<[1], [0], [0], [1], [0, 0, 1, 1], [], []>} : vector<8x18xf32>, vector<18x4xf32>, vector<8x4xf32> -> vector<8x4xf32>
    %215 = arith.addf %207, %214 : vector<8x4xf32>
    %c3_i32_206 = arith.constant 3 : i32
    %216 = arith.addi %191, %c3_i32_206 : i32
    %c0_207 = arith.constant 0 : index
    %217 = arith.index_cast %216 : i32 to index
    %c0_208 = arith.constant 0 : index
    %c0_209 = arith.constant 0 : index
    %218 = vector.load %arg3[%c0_207, %217, %c0_208, %c0_209] : memref<1x18x18x4xf32, #tpu.memory_space<vmem>>, vector<1x1x18x4xf32>
    %219 = vector.shape_cast %218 : vector<1x1x18x4xf32> to vector<18x4xf32>
    %c3_210 = arith.constant 3 : index
    %c0_211 = arith.constant 0 : index
    %c0_212 = arith.constant 0 : index
    %220 = vector.load %arg2[%c3_210, %c0_211, %c0_212] : memref<4x8x18xf32, #tpu.memory_space<vmem>>, vector<1x8x18xf32>
    %221 = vector.shape_cast %220 : vector<1x8x18xf32> to vector<8x18xf32>
    %cst_213 = arith.constant dense<0.000000e+00> : vector<8x4xf32>
    %222 = tpu.matmul %221, %219, %cst_213 {dimension_numbers = #tpu.dot_dimension_numbers<[1], [0], [0], [1], [0, 0, 1, 1], [], []>} : vector<8x18xf32>, vector<18x4xf32>, vector<8x4xf32> -> vector<8x4xf32>
    %223 = arith.addf %215, %222 : vector<8x4xf32>
    %c0_214 = arith.constant 0 : index
    %224 = arith.index_cast %c5_i32 : i32 to index
    %c0_215 = arith.constant 0 : index
    %c0_216 = arith.constant 0 : index
    %225 = vector.load %arg4[%c0_214, %224, %c0_215, %c0_216] : memref<1x8x8x4xf32, #tpu.memory_space<vmem>>, vector<1x1x8x4xf32>
    %226 = vector.shape_cast %225 : vector<1x1x8x4xf32> to vector<8x4xf32>
    %227 = vector.shape_cast %223 : vector<8x4xf32> to vector<1x1x8x4xf32>
    tpu.vector_store %arg4[%c0_214, %224, %c0_215, %c0_216], %227 {strides = array<i32>} : memref<1x8x8x4xf32, #tpu.memory_space<vmem>>, vector<1x1x8x4xf32>,
    %c6_i32 = arith.constant 6 : i32
    %cst_217 = arith.constant 0.000000e+00 : f32
    %228 = vector.broadcast %cst_217 : f32 to vector<8x4xf32>
    %c2_i32_218 = arith.constant 2 : i32
    %229 = arith.muli %c6_i32, %c2_i32_218 : i32
    %c0_i32_219 = arith.constant 0 : i32
    %230 = arith.addi %229, %c0_i32_219 : i32
    %c0_220 = arith.constant 0 : index
    %231 = arith.index_cast %230 : i32 to index
    %c0_221 = arith.constant 0 : index
    %c0_222 = arith.constant 0 : index
    %232 = vector.load %arg3[%c0_220, %231, %c0_221, %c0_222] : memref<1x18x18x4xf32, #tpu.memory_space<vmem>>, vector<1x1x18x4xf32>
    %233 = vector.shape_cast %232 : vector<1x1x18x4xf32> to vector<18x4xf32>
    %c0_223 = arith.constant 0 : index
    %c0_224 = arith.constant 0 : index
    %c0_225 = arith.constant 0 : index
    %234 = vector.load %arg2[%c0_223, %c0_224, %c0_225] : memref<4x8x18xf32, #tpu.memory_space<vmem>>, vector<1x8x18xf32>
    %235 = vector.shape_cast %234 : vector<1x8x18xf32> to vector<8x18xf32>
    %cst_226 = arith.constant dense<0.000000e+00> : vector<8x4xf32>
    %236 = tpu.matmul %235, %233, %cst_226 {dimension_numbers = #tpu.dot_dimension_numbers<[1], [0], [0], [1], [0, 0, 1, 1], [], []>} : vector<8x18xf32>, vector<18x4xf32>, vector<8x4xf32> -> vector<8x4xf32>
    %237 = arith.addf %228, %236 : vector<8x4xf32>
    %c1_i32_227 = arith.constant 1 : i32
    %238 = arith.addi %229, %c1_i32_227 : i32
    %c0_228 = arith.constant 0 : index
    %239 = arith.index_cast %238 : i32 to index
    %c0_229 = arith.constant 0 : index
    %c0_230 = arith.constant 0 : index
    %240 = vector.load %arg3[%c0_228, %239, %c0_229, %c0_230] : memref<1x18x18x4xf32, #tpu.memory_space<vmem>>, vector<1x1x18x4xf32>
    %241 = vector.shape_cast %240 : vector<1x1x18x4xf32> to vector<18x4xf32>
    %c1_231 = arith.constant 1 : index
    %c0_232 = arith.constant 0 : index
    %c0_233 = arith.constant 0 : index
    %242 = vector.load %arg2[%c1_231, %c0_232, %c0_233] : memref<4x8x18xf32, #tpu.memory_space<vmem>>, vector<1x8x18xf32>
    %243 = vector.shape_cast %242 : vector<1x8x18xf32> to vector<8x18xf32>
    %cst_234 = arith.constant dense<0.000000e+00> : vector<8x4xf32>
    %244 = tpu.matmul %243, %241, %cst_234 {dimension_numbers = #tpu.dot_dimension_numbers<[1], [0], [0], [1], [0, 0, 1, 1], [], []>} : vector<8x18xf32>, vector<18x4xf32>, vector<8x4xf32> -> vector<8x4xf32>
    %245 = arith.addf %237, %244 : vector<8x4xf32>
    %c2_i32_235 = arith.constant 2 : i32
    %246 = arith.addi %229, %c2_i32_235 : i32
    %c0_236 = arith.constant 0 : index
    %247 = arith.index_cast %246 : i32 to index
    %c0_237 = arith.constant 0 : index
    %c0_238 = arith.constant 0 : index
    %248 = vector.load %arg3[%c0_236, %247, %c0_237, %c0_238] : memref<1x18x18x4xf32, #tpu.memory_space<vmem>>, vector<1x1x18x4xf32>
    %249 = vector.shape_cast %248 : vector<1x1x18x4xf32> to vector<18x4xf32>
    %c2_239 = arith.constant 2 : index
    %c0_240 = arith.constant 0 : index
    %c0_241 = arith.constant 0 : index
    %250 = vector.load %arg2[%c2_239, %c0_240, %c0_241] : memref<4x8x18xf32, #tpu.memory_space<vmem>>, vector<1x8x18xf32>
    %251 = vector.shape_cast %250 : vector<1x8x18xf32> to vector<8x18xf32>
    %cst_242 = arith.constant dense<0.000000e+00> : vector<8x4xf32>
    %252 = tpu.matmul %251, %249, %cst_242 {dimension_numbers = #tpu.dot_dimension_numbers<[1], [0], [0], [1], [0, 0, 1, 1], [], []>} : vector<8x18xf32>, vector<18x4xf32>, vector<8x4xf32> -> vector<8x4xf32>
    %253 = arith.addf %245, %252 : vector<8x4xf32>
    %c3_i32_243 = arith.constant 3 : i32
    %254 = arith.addi %229, %c3_i32_243 : i32
    %c0_244 = arith.constant 0 : index
    %255 = arith.index_cast %254 : i32 to index
    %c0_245 = arith.constant 0 : index
    %c0_246 = arith.constant 0 : index
    %256 = vector.load %arg3[%c0_244, %255, %c0_245, %c0_246] : memref<1x18x18x4xf32, #tpu.memory_space<vmem>>, vector<1x1x18x4xf32>
    %257 = vector.shape_cast %256 : vector<1x1x18x4xf32> to vector<18x4xf32>
    %c3_247 = arith.constant 3 : index
    %c0_248 = arith.constant 0 : index
    %c0_249 = arith.constant 0 : index
    %258 = vector.load %arg2[%c3_247, %c0_248, %c0_249] : memref<4x8x18xf32, #tpu.memory_space<vmem>>, vector<1x8x18xf32>
    %259 = vector.shape_cast %258 : vector<1x8x18xf32> to vector<8x18xf32>
    %cst_250 = arith.constant dense<0.000000e+00> : vector<8x4xf32>
    %260 = tpu.matmul %259, %257, %cst_250 {dimension_numbers = #tpu.dot_dimension_numbers<[1], [0], [0], [1], [0, 0, 1, 1], [], []>} : vector<8x18xf32>, vector<18x4xf32>, vector<8x4xf32> -> vector<8x4xf32>
    %261 = arith.addf %253, %260 : vector<8x4xf32>
    %c0_251 = arith.constant 0 : index
    %262 = arith.index_cast %c6_i32 : i32 to index
    %c0_252 = arith.constant 0 : index
    %c0_253 = arith.constant 0 : index
    %263 = vector.load %arg4[%c0_251, %262, %c0_252, %c0_253] : memref<1x8x8x4xf32, #tpu.memory_space<vmem>>, vector<1x1x8x4xf32>
    %264 = vector.shape_cast %263 : vector<1x1x8x4xf32> to vector<8x4xf32>
    %265 = vector.shape_cast %261 : vector<8x4xf32> to vector<1x1x8x4xf32>
    tpu.vector_store %arg4[%c0_251, %262, %c0_252, %c0_253], %265 {strides = array<i32>} : memref<1x8x8x4xf32, #tpu.memory_space<vmem>>, vector<1x1x8x4xf32>,
    %c7_i32 = arith.constant 7 : i32
    %cst_254 = arith.constant 0.000000e+00 : f32
    %266 = vector.broadcast %cst_254 : f32 to vector<8x4xf32>
    %c2_i32_255 = arith.constant 2 : i32
    %267 = arith.muli %c7_i32, %c2_i32_255 : i32
    %c0_i32_256 = arith.constant 0 : i32
    %268 = arith.addi %267, %c0_i32_256 : i32
    %c0_257 = arith.constant 0 : index
    %269 = arith.index_cast %268 : i32 to index
    %c0_258 = arith.constant 0 : index
    %c0_259 = arith.constant 0 : index
    %270 = vector.load %arg3[%c0_257, %269, %c0_258, %c0_259] : memref<1x18x18x4xf32, #tpu.memory_space<vmem>>, vector<1x1x18x4xf32>
    %271 = vector.shape_cast %270 : vector<1x1x18x4xf32> to vector<18x4xf32>
    %c0_260 = arith.constant 0 : index
    %c0_261 = arith.constant 0 : index
    %c0_262 = arith.constant 0 : index
    %272 = vector.load %arg2[%c0_260, %c0_261, %c0_262] : memref<4x8x18xf32, #tpu.memory_space<vmem>>, vector<1x8x18xf32>
    %273 = vector.shape_cast %272 : vector<1x8x18xf32> to vector<8x18xf32>
    %cst_263 = arith.constant dense<0.000000e+00> : vector<8x4xf32>
    %274 = tpu.matmul %273, %271, %cst_263 {dimension_numbers = #tpu.dot_dimension_numbers<[1], [0], [0], [1], [0, 0, 1, 1], [], []>} : vector<8x18xf32>, vector<18x4xf32>, vector<8x4xf32> -> vector<8x4xf32>
    %275 = arith.addf %266, %274 : vector<8x4xf32>
    %c1_i32_264 = arith.constant 1 : i32
    %276 = arith.addi %267, %c1_i32_264 : i32
    %c0_265 = arith.constant 0 : index
    %277 = arith.index_cast %276 : i32 to index
    %c0_266 = arith.constant 0 : index
    %c0_267 = arith.constant 0 : index
    %278 = vector.load %arg3[%c0_265, %277, %c0_266, %c0_267] : memref<1x18x18x4xf32, #tpu.memory_space<vmem>>, vector<1x1x18x4xf32>
    %279 = vector.shape_cast %278 : vector<1x1x18x4xf32> to vector<18x4xf32>
    %c1_268 = arith.constant 1 : index
    %c0_269 = arith.constant 0 : index
    %c0_270 = arith.constant 0 : index
    %280 = vector.load %arg2[%c1_268, %c0_269, %c0_270] : memref<4x8x18xf32, #tpu.memory_space<vmem>>, vector<1x8x18xf32>
    %281 = vector.shape_cast %280 : vector<1x8x18xf32> to vector<8x18xf32>
    %cst_271 = arith.constant dense<0.000000e+00> : vector<8x4xf32>
    %282 = tpu.matmul %281, %279, %cst_271 {dimension_numbers = #tpu.dot_dimension_numbers<[1], [0], [0], [1], [0, 0, 1, 1], [], []>} : vector<8x18xf32>, vector<18x4xf32>, vector<8x4xf32> -> vector<8x4xf32>
    %283 = arith.addf %275, %282 : vector<8x4xf32>
    %c2_i32_272 = arith.constant 2 : i32
    %284 = arith.addi %267, %c2_i32_272 : i32
    %c0_273 = arith.constant 0 : index
    %285 = arith.index_cast %284 : i32 to index
    %c0_274 = arith.constant 0 : index
    %c0_275 = arith.constant 0 : index
    %286 = vector.load %arg3[%c0_273, %285, %c0_274, %c0_275] : memref<1x18x18x4xf32, #tpu.memory_space<vmem>>, vector<1x1x18x4xf32>
    %287 = vector.shape_cast %286 : vector<1x1x18x4xf32> to vector<18x4xf32>
    %c2_276 = arith.constant 2 : index
    %c0_277 = arith.constant 0 : index
    %c0_278 = arith.constant 0 : index
    %288 = vector.load %arg2[%c2_276, %c0_277, %c0_278] : memref<4x8x18xf32, #tpu.memory_space<vmem>>, vector<1x8x18xf32>
    %289 = vector.shape_cast %288 : vector<1x8x18xf32> to vector<8x18xf32>
    %cst_279 = arith.constant dense<0.000000e+00> : vector<8x4xf32>
    %290 = tpu.matmul %289, %287, %cst_279 {dimension_numbers = #tpu.dot_dimension_numbers<[1], [0], [0], [1], [0, 0, 1, 1], [], []>} : vector<8x18xf32>, vector<18x4xf32>, vector<8x4xf32> -> vector<8x4xf32>
    %291 = arith.addf %283, %290 : vector<8x4xf32>
    %c3_i32_280 = arith.constant 3 : i32
    %292 = arith.addi %267, %c3_i32_280 : i32
    %c0_281 = arith.constant 0 : index
    %293 = arith.index_cast %292 : i32 to index
    %c0_282 = arith.constant 0 : index
    %c0_283 = arith.constant 0 : index
    %294 = vector.load %arg3[%c0_281, %293, %c0_282, %c0_283] : memref<1x18x18x4xf32, #tpu.memory_space<vmem>>, vector<1x1x18x4xf32>
    %295 = vector.shape_cast %294 : vector<1x1x18x4xf32> to vector<18x4xf32>
    %c3_284 = arith.constant 3 : index
    %c0_285 = arith.constant 0 : index
    %c0_286 = arith.constant 0 : index
    %296 = vector.load %arg2[%c3_284, %c0_285, %c0_286] : memref<4x8x18xf32, #tpu.memory_space<vmem>>, vector<1x8x18xf32>
    %297 = vector.shape_cast %296 : vector<1x8x18xf32> to vector<8x18xf32>
    %cst_287 = arith.constant dense<0.000000e+00> : vector<8x4xf32>
    %298 = tpu.matmul %297, %295, %cst_287 {dimension_numbers = #tpu.dot_dimension_numbers<[1], [0], [0], [1], [0, 0, 1, 1], [], []>} : vector<8x18xf32>, vector<18x4xf32>, vector<8x4xf32> -> vector<8x4xf32>
    %299 = arith.addf %291, %298 : vector<8x4xf32>
    %c0_288 = arith.constant 0 : index
    %300 = arith.index_cast %c7_i32 : i32 to index
    %c0_289 = arith.constant 0 : index
    %c0_290 = arith.constant 0 : index
    %301 = vector.load %arg4[%c0_288, %300, %c0_289, %c0_290] : memref<1x8x8x4xf32, #tpu.memory_space<vmem>>, vector<1x1x8x4xf32>
    %302 = vector.shape_cast %301 : vector<1x1x8x4xf32> to vector<8x4xf32>
    %303 = vector.shape_cast %299 : vector<8x4xf32> to vector<1x1x8x4xf32>
    tpu.vector_store %arg4[%c0_288, %300, %c0_289, %c0_290], %303 {strides = array<i32>} : memref<1x8x8x4xf32, #tpu.memory_space<vmem>>, vector<1x1x8x4xf32>,
    %c8_i32 = arith.constant 8 : i32
    return
  }
  func.func @transform_0(%arg0: i32, %arg1: i32) -> (i32, i32, i32) {
    %c0_i32 = arith.constant 0 : i32
    %c0_i32_0 = arith.constant 0 : i32
    %c0_i32_1 = arith.constant 0 : i32
    %c0_i32_2 = arith.constant 0 : i32
    return %c0_i32, %c0_i32_0, %c0_i32_1 : i32, i32, i32
  }
  func.func @transform_1(%arg0: i32, %arg1: i32) -> (i32, i32, i32, i32) {
    %c0_i32 = arith.constant 0 : i32
    %c0_i32_0 = arith.constant 0 : i32
    %c0_i32_1 = arith.constant 0 : i32
    return %arg0, %c0_i32, %c0_i32_0, %arg1 : i32, i32, i32, i32
  }
  func.func @transform_2(%arg0: i32, %arg1: i32) -> (i32, i32, i32, i32) {
    %c0_i32 = arith.constant 0 : i32
    %c0_i32_0 = arith.constant 0 : i32
    %c0_i32_1 = arith.constant 0 : i32
    return %arg0, %c0_i32, %c0_i32_0, %arg1 : i32, i32, i32, i32
  }
}

</mosaic_0001>

<bundles_post_ra>
// kernel: tpu_custom_call.1
= control target key start
LH: loop header
LB: loop body
LE: loop exit
PB: predicated region body
PF: predicated region fallthrough
CT: control target
= control target key end

     0   :  { %s3701_s9 = smov 0   ;;  %s3703_s10 = smov 0   ;;  %s4060_s0 = inlined_call_operand.vmem [shape: f32[4,8,18], index: 0, kind: input, shape index: {}]   ;;  %s4061_s1 = inlined_call_operand.vmem [shape: f32[2,18,18,4], index: 1, kind: input, shape index: {}]   ;;  %s4062_s2 = inlined_call_operand.vmem [shape: f32[2,8,8,4], index: 2, kind: output, shape index: {}]  }
   0x1   :  { %s3705_s11 = smov 0  }
   0x2 LB: > { %s24_s12 = sadd.s32 1, %s3677_s10  ;;  %p2876_p0 = scmp.ge.s32.totalorder %s3681_s11, 1  ;;  %s3681_s11 = sphi %s3705_s11, %s12_s11   ;;  %s3677_s10 = sphi %s3703_s10, %s4064_s10   ;;  %s3673_s9 = sphi %s3701_s9, %s4063_s9  }
   0x3   : > { %p26_p1 = scmp.ge.s32.totalorder %s24_s12, 2  ;;  %p131_p2 = scmp.lt.s32.totalorder %s3681_s11, 3 }
   0x5   : > { %s4066_s12 = smov (%p26_p1, %s24_s12), 0  ;;  %p132_p3 = pnand %p2876_p0, %p131_p2 }
   0x6   : > { %p159_p4 = scmp.lt.s32.totalorder (!%p132_p3), %s3673_s9, 1  ;;  %v3683_v0 = vmov (!%p132_p3), 0.0|0.0   ;;  %vm3684_vm0 = vmmov (!%p132_p3), 0   ;;  %v3685_v1 = vmov (!%p132_p3), 0.0   ;;  %vm189_vm1 = vcmask (!%p132_p3), 1041408   ;;  %v3748_v14 = vld [vmem:[%s4060_s0 + $0x8] sm:$0xff] (!%p132_p3) }
   0x7   : > { %135 = sbr.rel (%p132_p3) target bundleno = 354 (0x162), region = 28  ;;  %3487 = vmatprep.subr.bf16.mxu0 (!%p132_p3), %v3683_v0  ;;  %3499 = vmatprep.subr.bf16.mxu1 (!%p132_p3), %v3683_v0  ;;  %vm185_vm2 = vcmask (!%p132_p3), 146432   ;;  %v3771_v21 = vld [vmem:[%s4060_s0] sm:$0xff] (!%p132_p3)  ;;  %v3795_v27 = vld [vmem:[%s4060_s0 + $0x10] sm:$0xff] (!%p132_p3)  ;;  %v3818_v33 = vld [vmem:[%s4060_s0 + $0x18] sm:$0xff] (!%p132_p3)  ;;  %vm505_vm3 = vcmask (!%p132_p3), 31744  }
   0x8   : > { %3205 = vmatprep.mubr.msk.f32.mxu0 (!%p132_p3), %vm3684_vm0, %v3685_v1  ;;  %3241 = vmatprep.mubr.msk.f32.mxu1 (!%p132_p3), %vm3684_vm0, %v3685_v1 }
   0xe   : > { %s4068_s9 = smov (!%p159_p4, %s3673_s9), 1 }
   0xf   : > { %s3631_s13 = smul.u32 432, %s4068_s9  ;;  %s3070_s25 = sshll.u32 %s4068_s9, 6 }
  0x10   : > { %s174_s28 = scalar_lea.vmem %s4062_s2, %s3070_s25 }
  0x11   : > { %s3731_s16 = scalar_lea.vmem %s4061_s1, %s3631_s13 }
  0x12   : > { %v2880_v2 = vld [vmem:[%s3731_s16 + $0x18] sm:$0xff]  ;;  %v2881_v3 = vld [vmem:[%s3731_s16 + $0x20] sm:$0xff]  ;;  %v2903_v4 = vld [vmem:[%s3731_s16 + $0x48] sm:$0xff] }
  0x13   : > { %v3488_v5 = vpack.c.bf16 %v2881_v3, %v2880_v2  ;;  %v2904_v6 = vld [vmem:[%s3731_s16 + $0x50] sm:$0xff]  ;;  %v175_v8 = vld [vmem:[%s3731_s16] sm:$0xff]  ;;  %v176_v9 = vld [vmem:[%s3731_s16 + $0x8] sm:$0xff] }
  0x14   : > { %v3500_v7 = vpack.c.bf16 %v2904_v6, %v2903_v4  ;;  %v2882_v10 = vld [vmem:[%s3731_s16 + $0x28] sm:$0x3]  ;;  %v2900_v11 = vld [vmem:[%s3731_s16 + $0x30] sm:$0xff]  ;;  %v2901_v12 = vld [vmem:[%s3731_s16 + $0x38] sm:$0xff]  ;;  %v3491_v15 = vpack.c.bf16 %v176_v9, %v175_v8 }
  0x15   : > { %3489 = vmatpush3.bf16.msra.mxu0 %v3488_v5  ;;  %v2905_v13 = vld [vmem:[%s3731_s16 + $0x58] sm:$0x3]  ;;  %v3503_v16 = vpack.c.bf16 %v2901_v12, %v2900_v11  ;;  %v177_v17 = vld [vmem:[%s3731_s16 + $0x10] sm:$0x3]  ;;  %v2911_v18 = vld [vmem:[%s3731_s16 + $0x60] sm:$0xff] }
  0x16   : > { %3501 = vmatpush3.bf16.msra.mxu1 %v3500_v7  ;;  %3203 = vmatprep.subr.mxu0 %v3685_v1  ;;  %v2912_v19 = vld [vmem:[%s3731_s16 + $0x68] sm:$0xff]  ;;  %v2902_v20 = vld [vmem:[%s3731_s16 + $0x40] sm:$0x3]  ;;  %v2913_v24 = vld [vmem:[%s3731_s16 + $0x70] sm:$0x3] }
  0x17   : > { %3239 = vmatprep.subr.mxu1 %v3685_v1  ;;  %v3506_v22 = vpack.c.bf16 %v2912_v19, %v2911_v18  ;;  %v2890_v23 = vld [vmem:[%s3731_s16 + $0x40] sm:$0x3]  ;;  %v2917_v25 = vld [vmem:[%s3731_s16 + $0x78] sm:$0xff]  ;;  %v2919_v30 = vld [vmem:[%s3731_s16 + $0x88] sm:$0x3] }
  0x18   : > { %v2918_v26 = vld [vmem:[%s3731_s16 + $0x80] sm:$0xff]  ;;  %v2896_v29 = vld [vmem:[%s3731_s16 + $0x58] sm:$0x3]  ;;  %v2951_v31 = vld [vmem:[%s3731_s16 + $0xa8] sm:$0xff] }
  0x19   : > { %3204 = vmatpush3.msk.msra.mxu0 %vm189_vm1, %v2882_v10  ;;  %v3509_v28 = vpack.c.bf16 %v2918_v26, %v2917_v25  ;;  %v2952_v32 = vld [vmem:[%s3731_s16 + $0xb0] sm:$0xff]  ;;  %v2929_v35 = vld [vmem:[%s3731_s16 + $0x88] sm:$0x3]  ;;  %v2949_v37 = vld [vmem:[%s3731_s16 + $0x98] sm:$0xff] }
  0x1a   : > { %3240 = vmatpush3.msk.msra.mxu1 %vm189_vm1, %v2905_v13  ;;  %3206 = vmatmul.mubr.msk.f32.vlgmr.msra.gmra.mrb[0].mxu0 %vm185_vm2, %v3748_v14  ;;  %v3524_v34 = vpack.c.bf16 %v2952_v32, %v2951_v31  ;;  %v2948_v36 = vld [vmem:[%s3731_s16 + $0x90] sm:$0xff]  ;;  %v2953_v38 = vld [vmem:[%s3731_s16 + $0xb8] sm:$0x3]  ;;  %v2959_v41 = vld [vmem:[%s3731_s16 + $0xc0] sm:$0xff] }
  0x1b   : > { %3490 = vmatprep.subr.bf16.mxu0 %v3683_v0  ;;  %3242 = vmatmul.mubr.msk.f32.vlgmr.msra.gmra.mrb[0].mxu1 %vm185_vm2, %v3748_v14  ;;  %v3527_v39 = vpack.c.bf16 %v2949_v37, %v2948_v36  ;;  %v2926_v40 = vld [vmem:[%s3731_s16 + $0x70] sm:$0x3]  ;;  %v2960_v42 = vld [vmem:[%s3731_s16 + $0xc8] sm:$0xff]  ;;  %v2950_v43 = vld [vmem:[%s3731_s16 + $0xa0] sm:$0x3] }
  0x1c   : > { %3502 = vmatprep.subr.bf16.mxu1 %v3683_v0  ;;  %3492 = vmatpush3.bf16.msra.mxu0 %v3491_v15  ;;  %v3530_v44 = vpack.c.bf16 %v2960_v42, %v2959_v41  ;;  %v2937_v45 = vld [vmem:[%s3731_s16 + $0xa0] sm:$0x3]  ;;  %v2961_v46 = vld [vmem:[%s3731_s16 + $0xd0] sm:$0x3]  ;;  %v2965_v47 = vld [vmem:[%s3731_s16 + $0xd8] sm:$0xff] }
  0x1d   : > { %3504 = vmatpush3.bf16.msra.mxu1 %v3503_v16  ;;  %3212 = vmatprep.subr.mxu0 %v3685_v1  ;;  %v2966_v48 = vld [vmem:[%s3731_s16 + $0xe0] sm:$0xff]  ;;  %v2943_v50 = vld [vmem:[%s3731_s16 + $0xb8] sm:$0x3]  ;;  %v2967_v51 = vld [vmem:[%s3731_s16 + $0xe8] sm:$0x3] }
  0x1e   : > { %3248 = vmatprep.subr.mxu1 %v3685_v1  ;;  %3214 = vmatprep.mubr.msk.f32.mxu0 %vm3684_vm0, %v3685_v1  ;;  %v3533_v49 = vpack.c.bf16 %v2966_v48, %v2965_v47  ;;  %v2999_v52 = vld [vmem:[%s3731_s16 + $0x108] sm:$0xff]  ;;  %v3000_v53 = vld [vmem:[%s3731_s16 + $0x110] sm:$0xff]  ;;  %v2997_v57 = vld [vmem:[%s3731_s16 + $0xf8] sm:$0xff] }
  0x1f   : > { %3250 = vmatprep.mubr.msk.f32.mxu1 %vm3684_vm0, %v3685_v1  ;;  %v3548_v54 = vpack.c.bf16 %v3000_v53, %v2999_v52  ;;  %v2977_v55 = vld [vmem:[%s3731_s16 + $0xe8] sm:$0x3]  ;;  %v2996_v56 = vld [vmem:[%s3731_s16 + $0xf0] sm:$0xff]  ;;  %v3001_v58 = vld [vmem:[%s3731_s16 + $0x118] sm:$0x3] }
  0x20   : > { %3213 = vmatpush3.msk.msra.mxu0 %vm189_vm1, %v177_v17  ;;  %v3551_v59 = vpack.c.bf16 %v2997_v57, %v2996_v56  ;;  %v2974_v60 = vld [vmem:[%s3731_s16 + $0xd0] sm:$0x3]  ;;  %v3007_v61 = vld [vmem:[%s3731_s16 + $0x120] sm:$0xff]  ;;  %v3008_v62 = vld [vmem:[%s3731_s16 + $0x128] sm:$0xff] }
  0x21   : > { %3249 = vmatpush3.msk.msra.mxu1 %vm189_vm1, %v2902_v20  ;;  %3493 = vmatprep.subr.bf16.mxu0 %v3683_v0  ;;  %v2998_v63 = vld [vmem:[%s3731_s16 + $0x100] sm:$0x3]  ;;  %v3554_v2 = vpack.c.bf16 %v3008_v62, %v3007_v61  ;;  %v3009_v4 = vld [vmem:[%s3731_s16 + $0x130] sm:$0x3]  ;;  %v3013_v5 = vld [vmem:[%s3731_s16 + $0x138] sm:$0xff] }
  0x22   : > { %3215 = vmatmul.mubr.msk.f32.vlgmr.msra.gmra.mrb[0].mxu0 %vm185_vm2, %v3771_v21  ;;  %3505 = vmatprep.subr.bf16.mxu1 %v3683_v0  ;;  %v2985_v3 = vld [vmem:[%s3731_s16 + $0x100] sm:$0x3]  ;;  %v2991_v8 = vld [vmem:[%s3731_s16 + $0x118] sm:$0x3]  ;;  %v3015_v9 = vld [vmem:[%s3731_s16 + $0x148] sm:$0x3] }
  0x23   : > { %3251 = vmatmul.mubr.msk.f32.vlgmr.msra.gmra.mrb[0].mxu1 %vm185_vm2, %v3771_v21  ;;  %3495 = vmatpush3.bf16.msra.mxu0 %v3503_v16  ;;  %v3014_v6 = vld [vmem:[%s3731_s16 + $0x140] sm:$0xff]  ;;  %v3047_v10 = vld [vmem:[%s3731_s16 + $0x168] sm:$0xff]  ;;  %v3048_v11 = vld [vmem:[%s3731_s16 + $0x170] sm:$0xff] }
  0x24   : > { %3507 = vmatpush3.bf16.msra.mxu1 %v3506_v22  ;;  %3221 = vmatprep.subr.mxu0 %v3685_v1  ;;  %v3572_v12 = vpack.c.bf16 %v3048_v11, %v3047_v10  ;;  %v3025_v13 = vld [vmem:[%s3731_s16 + $0x148] sm:$0x3]  ;;  %v3044_v15 = vld [vmem:[%s3731_s16 + $0x150] sm:$0xff]  ;;  %v3045_v16 = vld [vmem:[%s3731_s16 + $0x158] sm:$0xff] }
  0x25   : > { %3257 = vmatprep.subr.mxu1 %v3685_v1  ;;  %3223 = vmatprep.mubr.msk.f32.mxu0 %vm3684_vm0, %v3685_v1  ;;  %v3049_v17 = vld [vmem:[%s3731_s16 + $0x178] sm:$0x3]  ;;  %v3575_v18 = vpack.c.bf16 %v3045_v16, %v3044_v15  ;;  %v3022_v19 = vld [vmem:[%s3731_s16 + $0x130] sm:$0x3]  ;;  %v3055_v20 = vld [vmem:[%s3731_s16 + $0x180] sm:$0xff] }
  0x26   : > { %3259 = vmatprep.mubr.msk.f32.mxu1 %vm3684_vm0, %v3685_v1  ;;  %v3057_v25 = vld [vmem:[%s3731_s16 + $0x190] sm:$0x3]  ;;  %v3061_v26 = vld [vmem:[%s3731_s16 + $0x198] sm:$0xff] }
  0x27   : > { %3222 = vmatpush3.msk.msra.mxu0 %vm189_vm1, %v2890_v23  ;;  %v3046_v23 = vld [vmem:[%s3731_s16 + $0x160] sm:$0x3] }
  0x28   : > { %3258 = vmatpush3.msk.msra.mxu1 %vm189_vm1, %v2913_v24  ;;  %3496 = vmatprep.subr.bf16.mxu0 %v3683_v0  ;;  %v3033_v24 = vld [vmem:[%s3731_s16 + $0x160] sm:$0x3] }
  0x29   : > { %3508 = vmatprep.subr.bf16.mxu1 %v3683_v0 }
  0x2a   : > { %3224 = vmatmul.mubr.msk.f32.vlgmr.msra.gmra.mrb[0].mxu0 %vm185_vm2, %v3795_v27 }
  0x2b   : > { %3260 = vmatmul.mubr.msk.f32.vlgmr.msra.gmra.mrb[0].mxu1 %vm185_vm2, %v3795_v27  ;;  %3498 = vmatpush3.bf16.msra.mxu0 %v3500_v7  ;;  %v3557_v7 = vpack.c.bf16 %v3014_v6, %v3013_v5 }
  0x2c   : > { %3510 = vmatpush3.bf16.msra.mxu1 %v3509_v28  ;;  %3230 = vmatprep.subr.mxu0 %v3685_v1 }
  0x2d   : > { %3266 = vmatprep.subr.mxu1 %v3685_v1  ;;  %3232 = vmatprep.mubr.msk.f32.mxu0 %vm3684_vm0, %v3685_v1 }
  0x2e   : > { %3268 = vmatprep.mubr.msk.f32.mxu1 %vm3684_vm0, %v3685_v1 }
  0x2f   : > { %3231 = vmatpush3.msk.msra.mxu0 %vm189_vm1, %v2896_v29  ;;  %v3039_v29 = vld [vmem:[%s3731_s16 + $0x178] sm:$0x3] }
  0x30   : > { %3267 = vmatpush3.msk.msra.mxu1 %vm189_vm1, %v2919_v30  ;;  %3511 = vmatprep.subr.bf16.mxu0 %v3683_v0  ;;  %v3063_v30 = vld [vmem:[%s3731_s16 + $0x1a8] sm:$0x3] }
  0x31   : > { %3523 = vmatprep.subr.bf16.mxu1 %v3683_v0 }
  0x32   : > { %3233 = vmatmul.mubr.msk.f32.vlgmr.msra.gmra.mrb[0].mxu0 %vm185_vm2, %v3818_v33 }
  0x33   : > { %3269 = vmatmul.mubr.msk.f32.vlgmr.msra.gmra.mrb[0].mxu1 %vm185_vm2, %v3818_v33  ;;  %3513 = vmatpush3.bf16.msra.mxu0 %v3509_v28  ;;  %v3062_v28 = vld [vmem:[%s3731_s16 + $0x1a0] sm:$0xff] }
  0x34   : > { %3525 = vmatpush3.bf16.msra.mxu1 %v3524_v34  ;;  %3275 = vmatprep.subr.mxu0 %v3685_v1 }
  0x35   : > { %3311 = vmatprep.subr.mxu1 %v3685_v1  ;;  %3277 = vmatprep.mubr.msk.f32.mxu0 %vm3684_vm0, %v3685_v1 }
  0x36   : > { %3313 = vmatprep.mubr.msk.f32.mxu1 %vm3684_vm0, %v3685_v1 }
  0x37   : > { %3276 = vmatpush3.msk.msra.mxu0 %vm189_vm1, %v2929_v35 }
  0x38   : > { %3312 = vmatpush3.msk.msra.mxu1 %vm189_vm1, %v2953_v38  ;;  %3278 = vmatmul.mubr.msk.f32.vlgmr.msra.gmra.mrb[2].mxu0 %vm185_vm2, %v3748_v14 }
  0x39   : > { %3514 = vmatprep.subr.bf16.mxu0 %v3683_v0  ;;  %3314 = vmatmul.mubr.msk.f32.vlgmr.msra.gmra.mrb[2].mxu1 %vm185_vm2, %v3748_v14 }
  0x3a   : > { %3526 = vmatprep.subr.bf16.mxu1 %v3683_v0  ;;  %3516 = vmatpush3.bf16.msra.mxu0 %v3506_v22  ;;  %v3056_v22 = vld [vmem:[%s3731_s16 + $0x188] sm:$0xff] }
  0x3b   : > { %3528 = vmatpush3.bf16.msra.mxu1 %v3527_v39  ;;  %3284 = vmatprep.subr.mxu0 %v3685_v1 }
  0x3c   : > { %3320 = vmatprep.subr.mxu1 %v3685_v1  ;;  %3286 = vmatprep.mubr.msk.f32.mxu0 %vm3684_vm0, %v3685_v1 }
  0x3d   : > { %3322 = vmatprep.mubr.msk.f32.mxu1 %vm3684_vm0, %v3685_v1 }
  0x3e   : > { %3285 = vmatpush3.msk.msra.mxu0 %vm189_vm1, %v2926_v40 }
  0x3f   : > { %3321 = vmatpush3.msk.msra.mxu1 %vm189_vm1, %v2950_v43  ;;  %3517 = vmatprep.subr.bf16.mxu0 %v3683_v0 }
  0x40   : > { %3287 = vmatmul.mubr.msk.f32.vlgmr.msra.gmra.mrb[2].mxu0 %vm185_vm2, %v3771_v21  ;;  %3529 = vmatprep.subr.bf16.mxu1 %v3683_v0 }
  0x41   : > { %3323 = vmatmul.mubr.msk.f32.vlgmr.msra.gmra.mrb[2].mxu1 %vm185_vm2, %v3771_v21  ;;  %3519 = vmatpush3.bf16.msra.mxu0 %v3527_v39 }
  0x42   : > { %3531 = vmatpush3.bf16.msra.mxu1 %v3530_v44  ;;  %3293 = vmatprep.subr.mxu0 %v3685_v1 }
  0x43   : > { %3329 = vmatprep.subr.mxu1 %v3685_v1  ;;  %3295 = vmatprep.mubr.msk.f32.mxu0 %vm3684_vm0, %v3685_v1 }
  0x44   : > { %3331 = vmatprep.mubr.msk.f32.mxu1 %vm3684_vm0, %v3685_v1 }
  0x45   : > { %3294 = vmatpush3.msk.msra.mxu0 %vm189_vm1, %v2937_v45 }
  0x46   : > { %3330 = vmatpush3.msk.msra.mxu1 %vm189_vm1, %v2961_v46  ;;  %3520 = vmatprep.subr.bf16.mxu0 %v3683_v0 }
  0x47   : > { %3532 = vmatprep.subr.bf16.mxu1 %v3683_v0 }
  0x48   : > { %3296 = vmatmul.mubr.msk.f32.vlgmr.msra.gmra.mrb[2].mxu0 %vm185_vm2, %v3795_v27 }
  0x49   : > { %3332 = vmatmul.mubr.msk.f32.vlgmr.msra.gmra.mrb[2].mxu1 %vm185_vm2, %v3795_v27  ;;  %3522 = vmatpush3.bf16.msra.mxu0 %v3524_v34 }
  0x4a   : > { %3534 = vmatpush3.bf16.msra.mxu1 %v3533_v49  ;;  %3302 = vmatprep.subr.mxu0 %v3685_v1 }
  0x4b   : > { %3338 = vmatprep.subr.mxu1 %v3685_v1  ;;  %3304 = vmatprep.mubr.msk.f32.mxu0 %vm3684_vm0, %v3685_v1 }
  0x4c   : > { %3340 = vmatprep.mubr.msk.f32.mxu1 %vm3684_vm0, %v3685_v1 }
  0x4d   : > { %3303 = vmatpush3.msk.msra.mxu0 %vm189_vm1, %v2943_v50 }
  0x4e   : > { %3339 = vmatpush3.msk.msra.mxu1 %vm189_vm1, %v2967_v51  ;;  %3535 = vmatprep.subr.bf16.mxu0 %v3683_v0 }
  0x4f   : > { %3547 = vmatprep.subr.bf16.mxu1 %v3683_v0 }
  0x50   : > { %3305 = vmatmul.mubr.msk.f32.vlgmr.msra.gmra.mrb[2].mxu0 %vm185_vm2, %v3818_v33 }
  0x51   : > { %3341 = vmatmul.mubr.msk.f32.vlgmr.msra.gmra.mrb[2].mxu1 %vm185_vm2, %v3818_v33  ;;  %3537 = vmatpush3.bf16.msra.mxu0 %v3533_v49 }
  0x52   : > { %3549 = vmatpush3.bf16.msra.mxu1 %v3548_v54  ;;  %3347 = vmatprep.subr.mxu0 %v3685_v1 }
  0x53   : > { %3383 = vmatprep.subr.mxu1 %v3685_v1  ;;  %3349 = vmatprep.mubr.msk.f32.mxu0 %vm3684_vm0, %v3685_v1 }
  0x54   : > { %3385 = vmatprep.mubr.msk.f32.mxu1 %vm3684_vm0, %v3685_v1 }
  0x55   : > { %3348 = vmatpush3.msk.msra.mxu0 %vm189_vm1, %v2977_v55 }
  0x56   : > { %3384 = vmatpush3.msk.msra.mxu1 %vm189_vm1, %v3001_v58  ;;  %3350 = vmatmul.mubr.msk.f32.vlgmr.msra.gmra.mrb[4].mxu0 %vm185_vm2, %v3748_v14 }
  0x57   : > { %3538 = vmatprep.subr.bf16.mxu0 %v3683_v0  ;;  %3386 = vmatmul.mubr.msk.f32.vlgmr.msra.gmra.mrb[4].mxu1 %vm185_vm2, %v3748_v14 }
  0x58   : > { %3550 = vmatprep.subr.bf16.mxu1 %v3683_v0  ;;  %3540 = vmatpush3.bf16.msra.mxu0 %v3530_v44 }
  0x59   : > { %3552 = vmatpush3.bf16.msra.mxu1 %v3551_v59  ;;  %3356 = vmatprep.subr.mxu0 %v3685_v1 }
  0x5a   : > { %3392 = vmatprep.subr.mxu1 %v3685_v1  ;;  %3358 = vmatprep.mubr.msk.f32.mxu0 %vm3684_vm0, %v3685_v1 }
  0x5b   : > { %3394 = vmatprep.mubr.msk.f32.mxu1 %vm3684_vm0, %v3685_v1 }
  0x5c   : > { %3357 = vmatpush3.msk.msra.mxu0 %vm189_vm1, %v2974_v60 }
  0x5d   : > { %3393 = vmatpush3.msk.msra.mxu1 %vm189_vm1, %v2998_v63  ;;  %3541 = vmatprep.subr.bf16.mxu0 %v3683_v0 }
  0x5e   : > { %3359 = vmatmul.mubr.msk.f32.vlgmr.msra.gmra.mrb[4].mxu0 %vm185_vm2, %v3771_v21  ;;  %3553 = vmatprep.subr.bf16.mxu1 %v3683_v0 }
  0x5f   : > { %3395 = vmatmul.mubr.msk.f32.vlgmr.msra.gmra.mrb[4].mxu1 %vm185_vm2, %v3771_v21  ;;  %3543 = vmatpush3.bf16.msra.mxu0 %v3551_v59 }
  0x60   : > { %3555 = vmatpush3.bf16.msra.mxu1 %v3554_v2  ;;  %3365 = vmatprep.subr.mxu0 %v3685_v1 }
  0x61   : > { %3401 = vmatprep.subr.mxu1 %v3685_v1  ;;  %3367 = vmatprep.mubr.msk.f32.mxu0 %vm3684_vm0, %v3685_v1 }
  0x62   : > { %3403 = vmatprep.mubr.msk.f32.mxu1 %vm3684_vm0, %v3685_v1 }
  0x63   : > { %3366 = vmatpush3.msk.msra.mxu0 %vm189_vm1, %v2985_v3 }
  0x64   : > { %3402 = vmatpush3.msk.msra.mxu1 %vm189_vm1, %v3009_v4  ;;  %3544 = vmatprep.subr.bf16.mxu0 %v3683_v0 }
  0x65   : > { %3556 = vmatprep.subr.bf16.mxu1 %v3683_v0 }
  0x66   : > { %3368 = vmatmul.mubr.msk.f32.vlgmr.msra.gmra.mrb[4].mxu0 %vm185_vm2, %v3795_v27 }
  0x67   : > { %3404 = vmatmul.mubr.msk.f32.vlgmr.msra.gmra.mrb[4].mxu1 %vm185_vm2, %v3795_v27  ;;  %3546 = vmatpush3.bf16.msra.mxu0 %v3548_v54 }
  0x68   : > { %3558 = vmatpush3.bf16.msra.mxu1 %v3557_v7  ;;  %3374 = vmatprep.subr.mxu0 %v3685_v1 }
  0x69   : > { %3410 = vmatprep.subr.mxu1 %v3685_v1  ;;  %3376 = vmatprep.mubr.msk.f32.mxu0 %vm3684_vm0, %v3685_v1 }
  0x6a   : > { %3412 = vmatprep.mubr.msk.f32.mxu1 %vm3684_vm0, %v3685_v1 }
  0x6b   : > { %3375 = vmatpush3.msk.msra.mxu0 %vm189_vm1, %v2991_v8 }
  0x6c   : > { %3411 = vmatpush3.msk.msra.mxu1 %vm189_vm1, %v3015_v9  ;;  %3559 = vmatprep.subr.bf16.mxu0 %v3683_v0 }
  0x6d   : > { %3571 = vmatprep.subr.bf16.mxu1 %v3683_v0 }
  0x6e   : > { %3377 = vmatmul.mubr.msk.f32.vlgmr.msra.gmra.mrb[4].mxu0 %vm185_vm2, %v3818_v33 }
  0x6f   : > { %3413 = vmatmul.mubr.msk.f32.vlgmr.msra.gmra.mrb[4].mxu1 %vm185_vm2, %v3818_v33  ;;  %3561 = vmatpush3.bf16.msra.mxu0 %v3557_v7 }
  0x70   : > { %3573 = vmatpush3.bf16.msra.mxu1 %v3572_v12  ;;  %3419 = vmatprep.subr.mxu0 %v3685_v1 }
  0x71   : > { %3455 = vmatprep.subr.mxu1 %v3685_v1  ;;  %3421 = vmatprep.mubr.msk.f32.mxu0 %vm3684_vm0, %v3685_v1 }
  0x72   : > { %3457 = vmatprep.mubr.msk.f32.mxu1 %vm3684_vm0, %v3685_v1 }
  0x73   : > { %3420 = vmatpush3.msk.msra.mxu0 %vm189_vm1, %v3025_v13 }
  0x74   : > { %3456 = vmatpush3.msk.msra.mxu1 %vm189_vm1, %v3049_v17  ;;  %3422 = vmatmul.mubr.msk.f32.vlgmr.msra.gmra.mrb[6].mxu0 %vm185_vm2, %v3748_v14 }
  0x75   : > { %3562 = vmatprep.subr.bf16.mxu0 %v3683_v0  ;;  %3458 = vmatmul.mubr.msk.f32.vlgmr.msra.gmra.mrb[6].mxu1 %vm185_vm2, %v3748_v14  ;;  %v3578_v14 = vpack.c.bf16 %v3056_v22, %v3055_v20 }
  0x76   : > { %3574 = vmatprep.subr.bf16.mxu1 %v3683_v0  ;;  %3564 = vmatpush3.bf16.msra.mxu0 %v3554_v2 }
  0x77   : > { %3576 = vmatpush3.bf16.msra.mxu1 %v3575_v18  ;;  %3428 = vmatprep.subr.mxu0 %v3685_v1 }
  0x78   : > { %3464 = vmatprep.subr.mxu1 %v3685_v1  ;;  %3430 = vmatprep.mubr.msk.f32.mxu0 %vm3684_vm0, %v3685_v1 }
  0x79   : > { %3466 = vmatprep.mubr.msk.f32.mxu1 %vm3684_vm0, %v3685_v1 }
  0x7a   : > { %3429 = vmatpush3.msk.msra.mxu0 %vm189_vm1, %v3022_v19 }
  0x7b   : > { %3465 = vmatpush3.msk.msra.mxu1 %vm189_vm1, %v3046_v23  ;;  %3565 = vmatprep.subr.bf16.mxu0 %v3683_v0 }
  0x7c   : > { %3431 = vmatmul.mubr.msk.f32.vlgmr.msra.gmra.mrb[6].mxu0 %vm185_vm2, %v3771_v21  ;;  %3577 = vmatprep.subr.bf16.mxu1 %v3683_v0 }
  0x7d   : > { %3467 = vmatmul.mubr.msk.f32.vlgmr.msra.gmra.mrb[6].mxu1 %vm185_vm2, %v3771_v21  ;;  %3567 = vmatpush3.bf16.msra.mxu0 %v3575_v18  ;;  %v3581_v21 = vpack.c.bf16 %v3062_v28, %v3061_v26 }
  0x7e   : > { %3579 = vmatpush3.bf16.msra.mxu1 %v3578_v14  ;;  %3437 = vmatprep.subr.mxu0 %v3685_v1 }
  0x7f   : > { %3473 = vmatprep.subr.mxu1 %v3685_v1  ;;  %3439 = vmatprep.mubr.msk.f32.mxu0 %vm3684_vm0, %v3685_v1 }
  0x80   : > { %3475 = vmatprep.mubr.msk.f32.mxu1 %vm3684_vm0, %v3685_v1 }
  0x81   : > { %3438 = vmatpush3.msk.msra.mxu0 %vm189_vm1, %v3033_v24 }
  0x82   : > { %3474 = vmatpush3.msk.msra.mxu1 %vm189_vm1, %v3057_v25  ;;  %3568 = vmatprep.subr.bf16.mxu0 %v3683_v0 }
  0x83   : > { %3580 = vmatprep.subr.bf16.mxu1 %v3683_v0 }
  0x84   : > { %3440 = vmatmul.mubr.msk.f32.vlgmr.msra.gmra.mrb[6].mxu0 %vm185_vm2, %v3795_v27 }
  0x85   : > { %3476 = vmatmul.mubr.msk.f32.vlgmr.msra.gmra.mrb[6].mxu1 %vm185_vm2, %v3795_v27  ;;  %3570 = vmatpush3.bf16.msra.mxu0 %v3572_v12 }
  0x86   : > { %3582 = vmatpush3.bf16.msra.mxu1 %v3581_v21  ;;  %3446 = vmatprep.subr.mxu0 %v3685_v1 }
  0x87   : > { %3482 = vmatprep.subr.mxu1 %v3685_v1  ;;  %3448 = vmatprep.mubr.msk.f32.mxu0 %vm3684_vm0, %v3685_v1 }
  0x88   : > { %3484 = vmatprep.mubr.msk.f32.mxu1 %vm3684_vm0, %v3685_v1 }
  0x89   : > { %3447 = vmatpush3.msk.msra.mxu0 %vm189_vm1, %v3039_v29 }
  0x8a   : > { %3483 = vmatpush3.msk.msra.mxu1 %vm189_vm1, %v3063_v30 }
  0x8c   : > { %3449 = vmatmul.mubr.msk.f32.vlgmr.msra.gmra.mrb[6].mxu0 %vm185_vm2, %v3818_v33 }
  0x8d   : > { %3485 = vmatmul.mubr.msk.f32.vlgmr.msra.gmra.mrb[6].mxu1 %vm185_vm2, %v3818_v33 }
 0x105   : > { %v500_v0 = vpop.f32.mrb[0].mxu0 }
 0x106   : > { %506 = vst.msk [vmem:[%s174_s28] sm:$0xff] %vm505_vm3, %v500_v0  ;;  %v826_v1 = vpop.f32.mrb[0].mxu1  ;;  %v3234_v27 = vpop.f32.mrb[1].mxu0 }
 0x107   : > { %2923 = vst.msk [vmem:[%s174_s28 + $0x8] sm:$0xff] %vm505_vm3, %v826_v1  ;;  %v3270_v31 = vpop.f32.mrb[1].mxu1 }
 0x123   : > { %v1152_v32 = vpop.f32.mrb[2].mxu0 }
 0x124   : > { %2947 = vst.msk [vmem:[%s174_s28 + $0x10] sm:$0xff] %vm505_vm3, %v1152_v32  ;;  %v1478_v34 = vpop.f32.mrb[2].mxu1  ;;  %v3306_v35 = vpop.f32.mrb[3].mxu0 }
 0x125   : > { %2971 = vst.msk [vmem:[%s174_s28 + $0x18] sm:$0xff] %vm505_vm3, %v1478_v34  ;;  %v3342_v33 = vpop.f32.mrb[3].mxu1 }
 0x141   : > { %v1804_v36 = vpop.f32.mrb[4].mxu0 }
 0x142   : > { %2995 = vst.msk [vmem:[%s174_s28 + $0x20] sm:$0xff] %vm505_vm3, %v1804_v36  ;;  %v2130_v37 = vpop.f32.mrb[4].mxu1  ;;  %v3378_v38 = vpop.f32.mrb[5].mxu0 }
 0x143   : > { %3019 = vst.msk [vmem:[%s174_s28 + $0x28] sm:$0xff] %vm505_vm3, %v2130_v37  ;;  %v3414_v39 = vpop.f32.mrb[5].mxu1 }
 0x15f   : > { %v2456_v40 = vpop.f32.mrb[6].mxu0 }
 0x160   : > { %3043 = vst.msk [vmem:[%s174_s28 + $0x30] sm:$0xff] %vm505_vm3, %v2456_v40  ;;  %v2782_v41 = vpop.f32.mrb[6].mxu1  ;;  %v3450_v42 = vpop.f32.mrb[7].mxu0 }
 0x161   : > { %3067 = vst.msk [vmem:[%s174_s28 + $0x38] sm:$0xff] %vm505_vm3, %v2782_v41  ;;  %v3486_v43 = vpop.f32.mrb[7].mxu1 }
 0x162 PF: > { %s12_s11 = sadd.s32 1, %s3681_s11   ;;  %s4063_s9 = smov %s3677_s10 }
 0x163   : > { %p9_p5 = scmp.ge.s32.totalorder %s12_s11, 4   ;;  %s4064_s10 = smov %s4066_s12 }
 0x165   :  { %11 = sbr.rel (!%p9_p5) target bundleno = 2 (0x2), region = 85 }

</bundles_post_ra>
